<compile_context>
chip_gen: v5e
topology: v5e:2x2
jax: 0.10.0
libtpu: 0.0.40
codegen_flags: <defaults>
</compile_context>

<pallas_src>
import functools

import jax
import jax.numpy as jnp
from jax.experimental import pallas as pl
from jax.experimental.pallas import tpu as pltpu

# ---------------- small synthetic problem sizes ----------------
B = 2       # batch
N = 512     # input point-cloud points
V = 384     # mesh vertices (SMPL has 6890; shrunk for a synthetic kernel)
J = 24      # SMPL joints
NB = J - 1  # 23 bones
NBETA = 10

# SMPL kinematic-tree parents (24 joints)
SMPL_PARENTS = [-1, 0, 0, 0, 1, 2, 3, 4, 5, 6, 7, 8,
                9, 9, 9, 12, 13, 14, 16, 17, 18, 19, 20, 21]


# =============================================================================
# Single fused kernel: p2m stub -> skeleton/bone-lengths -> beta MLP -> meshik stub.
# All intermediates (mesh, skeleton, bone lengths, betas) stay VMEM/vreg resident;
# nothing round-trips through HBM between stages.
#
# Row layout of every (3*B, X) value: row index = c*B + b   (c = xyz coord, b = batch).
# =============================================================================
def _fused_kernel(pcd_ref, w_ref, vt_ref, jreg_ref, dmat_ref,
                  w1_ref, b1_ref, w2_ref, b2_ref, w3_ref, b3_ref,
                  sdx_ref, sdy_ref, sdz_ref,
                  mesh_ref, sk_ref, betas_ref, verts_ref, trans_ref, shift_ref):
    # ---- stage 1: pose_mesh_net / pointcloud2mesh stub ----
    # TODO(synk): PCTv2_SegReg / pointcloud2mesh_net backbones are not provided;
    # replaced by a deterministic linear point-cloud -> mesh regressor.
    # (3B, N) bf16 @ (N, V) bf16 -> (3B, V) f32: one lane-dense MXU matmul covers
    # the whole batch and all xyz components.
    mesh = vt_ref[...] + 0.05 * jnp.dot(pcd_ref[...], w_ref[...],
                                        preferred_element_type=jnp.float32)   # (3B, V)
    mesh_ref[...] = mesh
    # NOTE: torch's mesh_out.detach() is a no-op here (forward-only fused kernel).

    # ---- stage 2: J_regressor @ mesh + bone lengths ----
    sk = jnp.dot(mesh, jreg_ref[...], preferred_element_type=jnp.float32)      # (3B, J)
    sk_ref[...] = sk
    # bones = child - parent, encoded once as a tiny (J, NB) difference matrix,
    # batched over all 3B rows in a single MXU op.
    bones = jnp.dot(sk, dmat_ref[...], preferred_element_type=jnp.float32)     # (3B, NB)
    bsq = bones * bones
    # sum over xyz = sum of the three B-row blocks (static sublane slices, no gather)
    rel_sq = bsq[0:B] + bsq[B:2 * B] + bsq[2 * B:3 * B]                        # (B, NB)
    rel_ps = jnp.sqrt(rel_sq)                                                  # (B, NB)

    # ---- stage 3: beta_regressor  Linear(69,96)->Linear(96,24)->Linear(24,10) ----
    # torch.cat([rel_ps, rel_ts, rel_ps - rel_ts]) @ W1 + b1 is algebraically folded
    # (rel_ts is a constant function of SMPL params) into a single (NB,96) effective
    # weight and a (1,96) effective bias computed at init time:
    #   h = rel_ps @ (W1a + W1c) + [rel_ts @ (W1b - W1c) + b1]
    h = jnp.dot(rel_ps, w1_ref[...], preferred_element_type=jnp.float32) + b1_ref[...]   # (B, 96)
    h = jnp.dot(h, w2_ref[...], preferred_element_type=jnp.float32) + b2_ref[...]        # (B, 24)
    betas = jnp.dot(h, w3_ref[...], preferred_element_type=jnp.float32) + b3_ref[...]    # (B, 10)
    betas_ref[...] = betas

    # ---- stage 4: SMPL meshik approximation ----
    # TODO(synk): SMPL_layer.meshik (SVD-based inverse-kinematics pose fit) is unavailable;
    # approximated by betas shape-blendshape deformation + centroid translation alignment.
    # Blendshapes as one matmul per xyz block (per-coordinate shapedirs passed separately
    # so no unaligned in-kernel slicing is needed).
    dx = jnp.dot(betas, sdx_ref[...], preferred_element_type=jnp.float32)      # (B, V)
    dy = jnp.dot(betas, sdy_ref[...], preferred_element_type=jnp.float32)      # (B, V)
    dz = jnp.dot(betas, sdz_ref[...], preferred_element_type=jnp.float32)      # (B, V)
    delta = jnp.concatenate([dx, dy, dz], axis=0)                              # (3B, V)
    v_shaped = vt_ref[...] + delta                                             # (3B, V)
    trans = jnp.mean(mesh - v_shaped, axis=-1, keepdims=True)                  # (3B, 1)
    verts = v_shaped + trans                                                   # (3B, V)
    verts_ref[...] = verts
    trans_ref[...] = trans
    shift_ref[...] = verts - mesh


# ============================ forward (single pallas_call) ============================
def pose_mesh_net_svd_forward(params, pcd):
    p = params

    # xyz-major, lane-dense layout for the kernel; bf16 point cloud for the MXU matmul.
    pcd_cm = jnp.transpose(pcd, (2, 0, 1)).reshape(3 * B, N).astype(jnp.bfloat16)

    # Whole working set < 1 MiB -> one kernel invocation, no grid (lowest launch
    # overhead, intermediates stay on-chip).
    # TODO(synk): at real SMPL scale (V=6890, N>=2048) tile the p2m matmul over K
    # with a VMEM accumulator and use a parallel batch grid axis for v7x's 2 TCs.
    (mesh_cm, sk_cm, betas, verts_cm, trans_cm, shift_cm) = pl.pallas_call(
        _fused_kernel,
        out_shape=(
            jax.ShapeDtypeStruct((3 * B, V), jnp.float32),   # mesh_out  (xyz-major)
            jax.ShapeDtypeStruct((3 * B, J), jnp.float32),   # pose skeleton (xyz-major)
            jax.ShapeDtypeStruct((B, NBETA), jnp.float32),   # betas
            jax.ShapeDtypeStruct((3 * B, V), jnp.float32),   # refined verts (xyz-major)
            jax.ShapeDtypeStruct((3 * B, 1), jnp.float32),   # trans (per c*B+b row)
            jax.ShapeDtypeStruct((3 * B, V), jnp.float32),   # vert shift (xyz-major)
        ),
        compiler_params=pltpu.CompilerParams(vmem_limit_bytes=32 << 20),
    )(pcd_cm, p["w_p2m_t"], p["vt_rep"], p["jreg_t"], p["dmat_t"],
      p["w1_eff"], p["b1_eff"], p["w2"], p["b2"], p["w3"], p["b3"],
      p["sdirs_x"], p["sdirs_y"], p["sdirs_z"])

    def to_bx3(x_cm):  # (3B, X) c-major -> (B, X, 3)
        return jnp.transpose(x_cm.reshape(3, B, -1), (1, 2, 0))

    mesh_out = to_bx3(mesh_cm)
    pose_skeleton = to_bx3(sk_cm)
    verts = to_bx3(verts_cm)
    shift = to_bx3(shift_cm)
    trans = jnp.transpose(trans_cm.reshape(3, B), (1, 0))          # (B, 3)

    # TODO(synk): output.theta (pose rotations from the SVD fit) not computed; placeholder.
    theta = jnp.zeros((B, 72), jnp.float32)

    return {
        "mesh_out": mesh_out,
        "pose": pose_skeleton,          # stub for the PCT 'pose' output
        "mesh_refine": verts,
        "vert_shift": [shift],
        "pose_theta": theta,
        "pose_beta": betas,
        "trans": trans,
    }


# ============================ deterministic params ============================
def init_params(key):
    ks = jax.random.split(key, 8)

    j_regressor = jax.random.uniform(ks[0], (J, V), jnp.float32)
    j_regressor = j_regressor / jnp.sum(j_regressor, axis=1, keepdims=True)

    d_mat = jnp.zeros((NB, J), jnp.float32)
    for j in range(1, J):
        d_mat = d_mat.at[j - 1, j].set(1.0)
        d_mat = d_mat.at[j - 1, SMPL_PARENTS[j]].set(-1.0)

    v_template = 0.1 * jax.random.normal(ks[1], (V, 3), jnp.float32)
    shapedirs = 0.01 * jax.random.normal(ks[2], (NBETA, V, 3), jnp.float32)

    # p2m stub weight stored transposed (N, V) and in bf16 (halves HBM bytes,
    # native MXU bf16 rate); fp32 accumulation happens in the kernel.
    w_p2m_t = (jax.random.normal(ks[3], (N, V), jnp.float32)
               / jnp.sqrt(float(N))).astype(jnp.bfloat16)

    def lin(kw, fan_in, fan_out):
        w = jax.random.normal(kw, (fan_in, fan_out), jnp.float32) / jnp.sqrt(float(fan_in))
        b = jnp.zeros((1, fan_out), jnp.float32)
        return w, b

    w1, b1 = lin(ks[4], 3 * NB, 96)
    w2, b2 = lin(ks[5], 96, 24)
    w3, b3 = lin(ks[6], 24, NBETA)

    # ---- hoisted constant: template skeleton bone lengths (pure function of params) ----
    template_skeleton = j_regressor @ v_template                       # (J, 3)
    t_bones = d_mat @ template_skeleton                                # (NB, 3)
    rel_ts = jnp.sqrt(jnp.sum(t_bones * t_bones, axis=-1))[None, :]    # (1, NB)

    # ---- fold the constant rel_ts branch of layer-1 of the beta MLP into weight/bias ----
    # h = cat([rel_ps, rel_ts, rel_ps - rel_ts]) @ W1 + b1
    #   = rel_ps @ (W1a + W1c) + (rel_ts @ (W1b - W1c) + b1)
    w1a, w1b, w1c = w1[0:NB], w1[NB:2 * NB], w1[2 * NB:3 * NB]
    w1_eff = w1a + w1c                                                 # (NB, 96)
    b1_eff = rel_ts @ (w1b - w1c) + b1                                 # (1, 96)

    # ---- lane-dense, xyz-major kernel layouts (row index = c*B + b) ----
    vt_rep = jnp.repeat(v_template.T, B, axis=0)                       # (3B, V)
    jreg_t = j_regressor.T                                             # (V, J)
    dmat_t = d_mat.T                                                   # (J, NB)
    sdirs_x = shapedirs[:, :, 0]                                       # (NBETA, V)
    sdirs_y = shapedirs[:, :, 1]                                       # (NBETA, V)
    sdirs_z = shapedirs[:, :, 2]                                       # (NBETA, V)

    return {
        "w_p2m_t": w_p2m_t,
        "vt_rep": vt_rep,
        "jreg_t": jreg_t,
        "dmat_t": dmat_t,
        "w1_eff": w1_eff, "b1_eff": b1_eff,
        "w2": w2, "b2": b2,
        "w3": w3, "b3": b3,
        "sdirs_x": sdirs_x, "sdirs_y": sdirs_y, "sdirs_z": sdirs_z,
    }


if __name__ == "__main__":
    key = jax.random.PRNGKey(0)
    pkey, dkey = jax.random.split(key)
    params = init_params(pkey)
    pcd = jax.random.normal(dkey, (B, N, 3), jnp.float32)

    fwd = jax.jit(functools.partial(pose_mesh_net_svd_forward, params))
    ret = fwd(pcd)
    jax.block_until_ready(ret)

    assert ret["mesh_out"].shape == (B, V, 3)
    assert ret["mesh_refine"].shape == (B, V, 3)
    assert ret["pose"].shape == (B, J, 3)
    assert ret["pose_beta"].shape == (B, NBETA)
    assert ret["trans"].shape == (B, 3)
    assert ret["vert_shift"][0].shape == (B, V, 3)
    print("KERNEL_OK")
</pallas_src>

<mosaic_0001>
module attributes {stable_mosaic.version = 11 : i64} {
  func.func @_fused_kernel(%arg0: memref<6x512xbf16, #tpu.memory_space<vmem>>, %arg1: memref<512x384xbf16, #tpu.memory_space<vmem>>, %arg2: memref<6x384xf32, #tpu.memory_space<vmem>>, %arg3: memref<384x24xf32, #tpu.memory_space<vmem>>, %arg4: memref<24x23xf32, #tpu.memory_space<vmem>>, %arg5: memref<23x96xf32, #tpu.memory_space<vmem>>, %arg6: memref<1x96xf32, #tpu.memory_space<vmem>>, %arg7: memref<96x24xf32, #tpu.memory_space<vmem>>, %arg8: memref<1x24xf32, #tpu.memory_space<vmem>>, %arg9: memref<24x10xf32, #tpu.memory_space<vmem>>, %arg10: memref<1x10xf32, #tpu.memory_space<vmem>>, %arg11: memref<10x384xf32, #tpu.memory_space<vmem>>, %arg12: memref<10x384xf32, #tpu.memory_space<vmem>>, %arg13: memref<10x384xf32, #tpu.memory_space<vmem>>, %arg14: memref<6x384xf32, #tpu.memory_space<vmem>>, %arg15: memref<6x24xf32, #tpu.memory_space<vmem>>, %arg16: memref<2x10xf32, #tpu.memory_space<vmem>>, %arg17: memref<6x384xf32, #tpu.memory_space<vmem>>, %arg18: memref<6x1xf32, #tpu.memory_space<vmem>>, %arg19: memref<6x384xf32, #tpu.memory_space<vmem>>) attributes {dimension_semantics = [], scalar_prefetch = 0 : i64, scratch_operands = 0 : i64, tpu.core_type = #tpu.core_type<tc>} {
    %c0 = arith.constant 0 : index
    %c0_0 = arith.constant 0 : index
    %0 = vector.load %arg2[%c0, %c0_0] : memref<6x384xf32, #tpu.memory_space<vmem>>, vector<6x384xf32>
    %c0_1 = arith.constant 0 : index
    %c0_2 = arith.constant 0 : index
    %1 = vector.load %arg0[%c0_1, %c0_2] : memref<6x512xbf16, #tpu.memory_space<vmem>>, vector<6x512xbf16>
    %c0_3 = arith.constant 0 : index
    %c0_4 = arith.constant 0 : index
    %2 = vector.load %arg1[%c0_3, %c0_4] : memref<512x384xbf16, #tpu.memory_space<vmem>>, vector<512x384xbf16>
    %cst = arith.constant dense<0.000000e+00> : vector<6x384xf32>
    %3 = tpu.matmul %1, %2, %cst {dimension_numbers = #tpu.dot_dimension_numbers<[1], [0], [0], [1], [0, 0, 1, 1], [], []>} : vector<6x512xbf16>, vector<512x384xbf16>, vector<6x384xf32> -> vector<6x384xf32>
    %cst_5 = arith.constant 5.000000e-02 : f32
    %4 = vector.broadcast %cst_5 : f32 to vector<6x384xf32>
    %5 = arith.mulf %4, %3 : vector<6x384xf32>
    %6 = arith.addf %0, %5 : vector<6x384xf32>
    %c0_6 = arith.constant 0 : index
    %c0_7 = arith.constant 0 : index
    %7 = vector.load %arg14[%c0_6, %c0_7] : memref<6x384xf32, #tpu.memory_space<vmem>>, vector<6x384xf32>
    tpu.vector_store %arg14[%c0_6, %c0_7], %6 {strides = array<i32>} : memref<6x384xf32, #tpu.memory_space<vmem>>, vector<6x384xf32>,
    %c0_8 = arith.constant 0 : index
    %c0_9 = arith.constant 0 : index
    %8 = vector.load %arg3[%c0_8, %c0_9] : memref<384x24xf32, #tpu.memory_space<vmem>>, vector<384x24xf32>
    %cst_10 = arith.constant dense<0.000000e+00> : vector<6x24xf32>
    %9 = tpu.matmul %6, %8, %cst_10 {dimension_numbers = #tpu.dot_dimension_numbers<[1], [0], [0], [1], [0, 0, 1, 1], [], []>} : vector<6x384xf32>, vector<384x24xf32>, vector<6x24xf32> -> vector<6x24xf32>
    %c0_11 = arith.constant 0 : index
    %c0_12 = arith.constant 0 : index
    %10 = vector.load %arg15[%c0_11, %c0_12] : memref<6x24xf32, #tpu.memory_space<vmem>>, vector<6x24xf32>
    tpu.vector_store %arg15[%c0_11, %c0_12], %9 {strides = array<i32>} : memref<6x24xf32, #tpu.memory_space<vmem>>, vector<6x24xf32>,
    %c0_13 = arith.constant 0 : index
    %c0_14 = arith.constant 0 : index
    %11 = vector.load %arg4[%c0_13, %c0_14] : memref<24x23xf32, #tpu.memory_space<vmem>>, vector<24x23xf32>
    %cst_15 = arith.constant dense<0.000000e+00> : vector<6x23xf32>
    %12 = tpu.matmul %9, %11, %cst_15 {dimension_numbers = #tpu.dot_dimension_numbers<[1], [0], [0], [1], [0, 0, 1, 1], [], []>} : vector<6x24xf32>, vector<24x23xf32>, vector<6x23xf32> -> vector<6x23xf32>
    %13 = arith.mulf %12, %12 : vector<6x23xf32>
    %14 = vector.extract_strided_slice %13 {offsets = [0, 0], sizes = [2, 23], strides = [1, 1]} : vector<6x23xf32> to vector<2x23xf32>
    %15 = vector.extract_strided_slice %13 {offsets = [2, 0], sizes = [2, 23], strides = [1, 1]} : vector<6x23xf32> to vector<2x23xf32>
    %16 = arith.addf %14, %15 : vector<2x23xf32>
    %17 = vector.extract_strided_slice %13 {offsets = [4, 0], sizes = [2, 23], strides = [1, 1]} : vector<6x23xf32> to vector<2x23xf32>
    %18 = arith.addf %16, %17 : vector<2x23xf32>
    %19 = math.sqrt %18 : vector<2x23xf32>
    %c0_16 = arith.constant 0 : index
    %c0_17 = arith.constant 0 : index
    %20 = vector.load %arg5[%c0_16, %c0_17] : memref<23x96xf32, #tpu.memory_space<vmem>>, vector<23x96xf32>
    %cst_18 = arith.constant dense<0.000000e+00> : vector<2x96xf32>
    %21 = tpu.matmul %19, %20, %cst_18 {dimension_numbers = #tpu.dot_dimension_numbers<[1], [0], [0], [1], [0, 0, 1, 1], [], []>} : vector<2x23xf32>, vector<23x96xf32>, vector<2x96xf32> -> vector<2x96xf32>
    %c0_19 = arith.constant 0 : index
    %c0_20 = arith.constant 0 : index
    %22 = vector.load %arg6[%c0_19, %c0_20] : memref<1x96xf32, #tpu.memory_space<vmem>>, vector<1x96xf32>
    %23 = vector.broadcast %22 : vector<1x96xf32> to vector<2x96xf32>
    %24 = arith.addf %21, %23 : vector<2x96xf32>
    %c0_21 = arith.constant 0 : index
    %c0_22 = arith.constant 0 : index
    %25 = vector.load %arg7[%c0_21, %c0_22] : memref<96x24xf32, #tpu.memory_space<vmem>>, vector<96x24xf32>
    %cst_23 = arith.constant dense<0.000000e+00> : vector<2x24xf32>
    %26 = tpu.matmul %24, %25, %cst_23 {dimension_numbers = #tpu.dot_dimension_numbers<[1], [0], [0], [1], [0, 0, 1, 1], [], []>} : vector<2x96xf32>, vector<96x24xf32>, vector<2x24xf32> -> vector<2x24xf32>
    %c0_24 = arith.constant 0 : index
    %c0_25 = arith.constant 0 : index
    %27 = vector.load %arg8[%c0_24, %c0_25] : memref<1x24xf32, #tpu.memory_space<vmem>>, vector<1x24xf32>
    %28 = vector.broadcast %27 : vector<1x24xf32> to vector<2x24xf32>
    %29 = arith.addf %26, %28 : vector<2x24xf32>
    %c0_26 = arith.constant 0 : index
    %c0_27 = arith.constant 0 : index
    %30 = vector.load %arg9[%c0_26, %c0_27] : memref<24x10xf32, #tpu.memory_space<vmem>>, vector<24x10xf32>
    %cst_28 = arith.constant dense<0.000000e+00> : vector<2x10xf32>
    %31 = tpu.matmul %29, %30, %cst_28 {dimension_numbers = #tpu.dot_dimension_numbers<[1], [0], [0], [1], [0, 0, 1, 1], [], []>} : vector<2x24xf32>, vector<24x10xf32>, vector<2x10xf32> -> vector<2x10xf32>
    %c0_29 = arith.constant 0 : index
    %c0_30 = arith.constant 0 : index
    %32 = vector.load %arg10[%c0_29, %c0_30] : memref<1x10xf32, #tpu.memory_space<vmem>>, vector<1x10xf32>
    %33 = vector.broadcast %32 : vector<1x10xf32> to vector<2x10xf32>
    %34 = arith.addf %31, %33 : vector<2x10xf32>
    %c0_31 = arith.constant 0 : index
    %c0_32 = arith.constant 0 : index
    %35 = vector.load %arg16[%c0_31, %c0_32] : memref<2x10xf32, #tpu.memory_space<vmem>>, vector<2x10xf32>
    tpu.vector_store %arg16[%c0_31, %c0_32], %34 {strides = array<i32>} : memref<2x10xf32, #tpu.memory_space<vmem>>, vector<2x10xf32>,
    %c0_33 = arith.constant 0 : index
    %c0_34 = arith.constant 0 : index
    %36 = vector.load %arg11[%c0_33, %c0_34] : memref<10x384xf32, #tpu.memory_space<vmem>>, vector<10x384xf32>
    %cst_35 = arith.constant dense<0.000000e+00> : vector<2x384xf32>
    %37 = tpu.matmul %34, %36, %cst_35 {dimension_numbers = #tpu.dot_dimension_numbers<[1], [0], [0], [1], [0, 0, 1, 1], [], []>} : vector<2x10xf32>, vector<10x384xf32>, vector<2x384xf32> -> vector<2x384xf32>
    %c0_36 = arith.constant 0 : index
    %c0_37 = arith.constant 0 : index
    %38 = vector.load %arg12[%c0_36, %c0_37] : memref<10x384xf32, #tpu.memory_space<vmem>>, vector<10x384xf32>
    %cst_38 = arith.constant dense<0.000000e+00> : vector<2x384xf32>
    %39 = tpu.matmul %34, %38, %cst_38 {dimension_numbers = #tpu.dot_dimension_numbers<[1], [0], [0], [1], [0, 0, 1, 1], [], []>} : vector<2x10xf32>, vector<10x384xf32>, vector<2x384xf32> -> vector<2x384xf32>
    %c0_39 = arith.constant 0 : index
    %c0_40 = arith.constant 0 : index
    %40 = vector.load %arg13[%c0_39, %c0_40] : memref<10x384xf32, #tpu.memory_space<vmem>>, vector<10x384xf32>
    %cst_41 = arith.constant dense<0.000000e+00> : vector<2x384xf32>
    %41 = tpu.matmul %34, %40, %cst_41 {dimension_numbers = #tpu.dot_dimension_numbers<[1], [0], [0], [1], [0, 0, 1, 1], [], []>} : vector<2x10xf32>, vector<10x384xf32>, vector<2x384xf32> -> vector<2x384xf32>
    %42 = tpu.concatenate %37, %39, %41 in 0 : vector<2x384xf32>, vector<2x384xf32>, vector<2x384xf32> -> vector<6x384xf32>
    %c0_42 = arith.constant 0 : index
    %c0_43 = arith.constant 0 : index
    %43 = vector.load %arg2[%c0_42, %c0_43] : memref<6x384xf32, #tpu.memory_space<vmem>>, vector<6x384xf32>
    %44 = arith.addf %43, %42 : vector<6x384xf32>
    %45 = arith.subf %6, %44 : vector<6x384xf32>
    %cst_44 = arith.constant dense<0.000000e+00> : vector<6xf32>
    %46 = vector.multi_reduction <add>, %45, %cst_44 [1] : vector<6x384xf32> to vector<6xf32>
    %47 = vector.shape_cast %46 : vector<6xf32> to vector<6x1xf32>
    %cst_45 = arith.constant 3.840000e+02 : f32
    %48 = vector.broadcast %cst_45 : f32 to vector<6x1xf32>
    %49 = arith.divf %47, %48 : vector<6x1xf32>
    %50 = vector.broadcast %49 : vector<6x1xf32> to vector<6x384xf32>
    %51 = arith.addf %44, %50 : vector<6x384xf32>
    %c0_46 = arith.constant 0 : index
    %c0_47 = arith.constant 0 : index
    %52 = vector.load %arg17[%c0_46, %c0_47] : memref<6x384xf32, #tpu.memory_space<vmem>>, vector<6x384xf32>
    tpu.vector_store %arg17[%c0_46, %c0_47], %51 {strides = array<i32>} : memref<6x384xf32, #tpu.memory_space<vmem>>, vector<6x384xf32>,
    %c0_48 = arith.constant 0 : index
    %c0_49 = arith.constant 0 : index
    %53 = vector.load %arg18[%c0_48, %c0_49] : memref<6x1xf32, #tpu.memory_space<vmem>>, vector<6x1xf32>
    tpu.vector_store %arg18[%c0_48, %c0_49], %49 {strides = array<i32>} : memref<6x1xf32, #tpu.memory_space<vmem>>, vector<6x1xf32>,
    %54 = arith.subf %51, %6 : vector<6x384xf32>
    %c0_50 = arith.constant 0 : index
    %c0_51 = arith.constant 0 : index
    %55 = vector.load %arg19[%c0_50, %c0_51] : memref<6x384xf32, #tpu.memory_space<vmem>>, vector<6x384xf32>
    tpu.vector_store %arg19[%c0_50, %c0_51], %54 {strides = array<i32>} : memref<6x384xf32, #tpu.memory_space<vmem>>, vector<6x384xf32>,
    return
  }
}

</mosaic_0001>

<bundles_post_ra>
// kernel: pose_mesh_net_svd_forward.1
= control target key start
LH: loop header
LB: loop body
LE: loop exit
PB: predicated region body
PF: predicated region fallthrough
CT: control target
= control target key end

     0   :  { %s2659_s0 = inlined_call_operand.vmem [shape: bf16[6,512], index: 0, kind: input, shape index: {}]   ;;  %s2660_s1 = inlined_call_operand.hbm [shape: bf16[512,384], index: 1, kind: input, shape index: {}]   ;;  %s2661_s2 = inlined_call_operand.vmem [shape: f32[6,384], index: 2, kind: input, shape index: {}]   ;;  %s2662_s3 = inlined_call_operand.hbm [shape: f32[384,24], index: 3, kind: input, shape index: {}]   ;;  %s2663_s4 = inlined_call_operand.hbm [shape: f32[24,23], index: 4, kind: input, shape index: {}]   ;;  %s2664_s5 = inlined_call_operand.hbm [shape: f32[23,96], index: 5, kind: input, shape index: {}]   ;;  %s2665_s6 = inlined_call_operand.vmem [shape: f32[1,96], index: 6, kind: input, shape index: {}]   ;;  %s2666_s7 = inlined_call_operand.hbm [shape: f32[96,24], index: 7, kind: input, shape index: {}]   ;;  %s2667_s8 = inlined_call_operand.vmem [shape: f32[1,24], index: 8, kind: input, shape index: {}]   ;;  %s2668_s9 = inlined_call_operand.hbm [shape: f32[24,10], index: 9, kind: input, shape index: {}]   ;;  %s2669_s10 = inlined_call_operand.vmem [shape: f32[1,10], index: 10, kind: input, shape index: {}]   ;;  %s2670_s11 = inlined_call_operand.vmem [shape: f32[10,384], index: 11, kind: input, shape index: {}]   ;;  %s2671_s12 = inlined_call_operand.hbm [shape: f32[10,384], index: 12, kind: input, shape index: {}]   ;;  %s2672_s13 = inlined_call_operand.hbm [shape: f32[10,384], index: 13, kind: input, shape index: {}]   ;;  %s2673_s14 = inlined_call_operand.vmem [shape: f32[6,384], index: 14, kind: output, shape index: {0}]   ;;  %s2674_s15 = inlined_call_operand.vmem [shape: f32[6,24], index: 15, kind: output, shape index: {1}]   ;;  %s2675_s16 = inlined_call_operand.hbm [shape: f32[2,10], index: 16, kind: output, shape index: {2}]   ;;  %s2676_s17 = inlined_call_operand.vmem [shape: f32[6,384], index: 17, kind: output, shape index: {3}]   ;;  %s2677_s18 = inlined_call_operand.vmem [shape: f32[6,1], index: 18, kind: output, shape index: {4}]   ;;  %s2678_s19 = inlined_call_operand.vmem [shape: f32[6,384], index: 19, kind: output, shape index: {5}]  }
   0x1   :  { %2681 = sst [smem:[#allocation23_spill]] %s2659_s0 }
   0x2   :  { %2682 = sst [smem:[#allocation24_spill]] %s2660_s1 }
   0x3   :  { %2683 = sst [smem:[#allocation25_spill]] %s2661_s2 }
   0x4   :  { %2684 = sst [smem:[#allocation26_spill]] %s2662_s3 }
   0x5   :  { %25 = vsyncpa [#allocation3], 0 }
   0x6   :  { %26 = vsyncpa [#allocation6], 0 }
   0x7   :  { %27 = vsyncpa [#allocation9], 0 }
   0x8   :  { %28 = vsyncpa [#allocation12], 0 }
   0x9   :  { %29 = vsyncpa [#allocation15], 0  ;;  %s2685_s20 = sld [smem:[#allocation26_spill]] }
   0xf   :  { %s52_s21 = sshll.u32 %s2685_s20, 4  ;;  %s53_s21 = int_to_ptr.hbm [resolvable:$true] %s52_s21 }
  0x10   :  { %30 = vsyncpa [#allocation4], 0  ;;  %s2356_s1 = smov [#allocation5]   ;;  %s78_s24 = sshll.u32 %s2664_s5, 4  ;;  %s79_s24 = int_to_ptr.hbm [resolvable:$true] %s78_s24 }
  0x11   :  { %s54_s22 = sshll.u32 %s2356_s1, 4  ;;  %s2357_s25 = smov 128   ;;  %s55_s22 = int_to_ptr.vmem [resolvable:$true] %s54_s22 }
  0x12   :  { %s2358_s3 = smov 8   ;;  %s2359_s26 = smov [#allocation8]  }
  0x13   :  { %60 = dma.hbm_to_vmem [thread:$0]  %s53_s21, 6144, %s55_s22, [#allocation6], %s2357_s25, %s2357_s25, %s2358_s3  }
  0x14   :  { %s80_s27 = sshll.u32 %s2359_s26, 4  ;;  %s108_s0 = sshll.u32 %s2668_s9, 4  ;;  %s81_s27 = int_to_ptr.vmem [resolvable:$true] %s80_s27  ;;  %s109_s0 = int_to_ptr.hbm [resolvable:$true] %s108_s0 }
  0x15   :  { %86 = dma.hbm_to_vmem [thread:$0]  %s79_s24, 384, %s81_s27, [#allocation9], %s2357_s25, %s2357_s25, %s2358_s3  }
  0x16   :  { %s2686_s20 = sld [smem:[#allocation24_spill]]  ;;  %s2360_s2 = smov [#allocation11]  }
  0x17   :  { %s110_s23 = sshll.u32 %s2360_s2, 4  ;;  %s2361_s21 = smov [#allocation2]   ;;  %s111_s23 = int_to_ptr.vmem [resolvable:$true] %s110_s23 }
  0x18   :  { %116 = dma.hbm_to_vmem [thread:$0]  %s109_s0, 384, %s111_s23, [#allocation12], %s2357_s25, %s2357_s25, %s2358_s3  }
  0x19   :  { %s39_s9 = sshll.u32 %s2361_s21, 4  ;;  %s2362_s22 = smov 192   ;;  %s40_s9 = int_to_ptr.vmem [resolvable:$true] %s39_s9 }
  0x1a   :  { %s2363_s26 = smov 12   ;;  %s65_s27 = sshll.u32 %s2663_s4, 4  ;;  %s66_s27 = int_to_ptr.hbm [resolvable:$true] %s65_s27 }
  0x1b   :  { %s2364_s29 = smov [#allocation7]   ;;  %s93_s2 = sshll.u32 %s2666_s7, 4  ;;  %s94_s2 = int_to_ptr.hbm [resolvable:$true] %s93_s2 }
  0x1c   :  { %s37_s1 = sshll.u32 %s2686_s20, 4  ;;  %s67_s5 = sshll.u32 %s2364_s29, 4  ;;  %s38_s1 = int_to_ptr.hbm [resolvable:$true] %s37_s1  ;;  %s68_s5 = int_to_ptr.vmem [resolvable:$true] %s67_s5 }
  0x1d   :  { %45 = dma.hbm_to_vmem [thread:$0]  %s38_s1, 12288, %s40_s9, [#allocation3], %s2362_s22, %s2362_s22, %s2363_s26  }
  0x1e   :  { %73 = dma.hbm_to_vmem [thread:$0]  %s66_s27, 384, %s68_s5, [#allocation6], %s2357_s25, %s2357_s25, %s2358_s3  }
  0x1f   :  { %s2365_s0 = smov [#allocation10]   ;;  %s125_s9 = sshll.u32 %s2671_s12, 4  ;;  %s126_s9 = int_to_ptr.hbm [resolvable:$true] %s125_s9 }
  0x20   :  { %s95_s23 = sshll.u32 %s2365_s0, 4  ;;  %s2366_s4 = smov [#allocation13]   ;;  %s96_s23 = int_to_ptr.vmem [resolvable:$true] %s95_s23 }
  0x21   :  { %101 = dma.hbm_to_vmem [thread:$0]  %s94_s2, 1536, %s96_s23, [#allocation9], %s2357_s25, %s2357_s25, %s2358_s3  }
  0x22   :  { %s127_s22 = sshll.u32 %s2366_s4, 4  ;;  %s138_s28 = sshll.u32 %s2672_s13, 4  ;;  %s128_s22 = int_to_ptr.vmem [resolvable:$true] %s127_s22  ;;  %s139_s28 = int_to_ptr.hbm [resolvable:$true] %s138_s28 }
  0x23   :  { %s2367_s24 = smov 384   ;;  %s2368_s27 = smov 24  }
  0x24   :  { %133 = dma.hbm_to_vmem [thread:$0]  %s126_s9, 768, %s128_s22, [#allocation12], %s2367_s24, %s2367_s24, %s2368_s27  }
  0x25   :  { %s2369_s29 = smov [#allocation14]  }
  0x26   :  { %s140_s5 = sshll.u32 %s2369_s29, 4  ;;  %s141_s5 = int_to_ptr.vmem [resolvable:$true] %s140_s5 }
  0x27   :  { %146 = dma.hbm_to_vmem [thread:$0]  %s139_s28, 768, %s141_s5, [#allocation15], %s2367_s24, %s2367_s24, %s2368_s27  }
  0x28   :  { %2344 = dma.done.wait [#allocation3], 12288  }
  0x29   :  { %2345 = vsyncadd [#allocation3], 4294955008 }
  0x2a   :  { %2346 = dma.done.wait [#allocation6], 6528  }
  0x2b   :  { %2347 = vsyncadd [#allocation6], 4294960768 }
  0x2c   :  { %2348 = dma.done.wait [#allocation9], 1920  }
  0x2d   :  { %2349 = vsyncadd [#allocation9], 4294965376 }
  0x2e   :  { %2350 = dma.done.wait [#allocation12], 1152  }
  0x2f   :  { %2351 = vsyncadd [#allocation12], 4294966144 }
  0x30   :  { %2352 = dma.done.wait [#allocation15], 768  }
  0x31   :  { %2353 = vsyncadd [#allocation15], 4294966528  ;;  %v1688_v0 = vld [vmem:[#allocation2 + $0xa8] sm:$0xf]  ;;  %v2031_v1 = vld [vmem:[#allocation2 + $0xb0] sm:$0xf0] }
  0x32   :  { %v1784_v2 = vld [vmem:[#allocation2 + $0x168] sm:$0xf]  ;;  %v1689_v3 = vor.u32 %v2031_v1, %v1688_v0  ;;  %v2055_v4 = vld [vmem:[#allocation2 + $0x170] sm:$0xf0]  ;;  %v1676_v11 = vld [vmem:[#allocation2 + $0x90] sm:$0xf] }
  0x33   :  { %v1880_v5 = vld [vmem:[#allocation2 + $0x228] sm:$0xf]  ;;  %v2079_v6 = vld [vmem:[#allocation2 + $0x230] sm:$0xf0]  ;;  %v1785_v7 = vor.u32 %v2055_v4, %v1784_v2  ;;  %v2028_v13 = vld [vmem:[#allocation2 + $0x98] sm:$0xf0] }
  0x34   :  { %v1881_v8 = vor.u32 %v2079_v6, %v1880_v5  ;;  %v1976_v9 = vld [vmem:[#allocation2 + $0x2e8] sm:$0xf]  ;;  %v2103_v10 = vld [vmem:[#allocation2 + $0x2f0] sm:$0xf0]  ;;  %838 = vmatpush.bf16.msra.mxu0 %v1689_v3  ;;  %v1772_v14 = vld [vmem:[#allocation2 + $0x150] sm:$0xf]  ;;  %v1677_v16 = vor.u32 %v2028_v13, %v1676_v11 }
  0x35   :  { %v1977_v12 = vor.u32 %v2103_v10, %v1976_v9  ;;  %v2052_v15 = vld [vmem:[#allocation2 + $0x158] sm:$0xf0]  ;;  %851 = vmatpush.bf16.msra.mxu1 %v1785_v7  ;;  %v1868_v18 = vld [vmem:[#allocation2 + $0x210] sm:$0xf]  ;;  %v1664_v23 = vld [vmem:[#allocation2 + $0x78] sm:$0xf] }
  0x36   :  { %864 = vmatpush.bf16.msra.mxu2 %v1881_v8  ;;  %v1773_v17 = vor.u32 %v2052_v15, %v1772_v14  ;;  %v2076_v19 = vld [vmem:[#allocation2 + $0x218] sm:$0xf0]  ;;  %v1964_v20 = vld [vmem:[#allocation2 + $0x2d0] sm:$0xf]  ;;  %v2025_v24 = vld [vmem:[#allocation2 + $0x80] sm:$0xf0] }
  0x37   :  { %877 = vmatpush.bf16.msra.mxu3 %v1977_v12  ;;  %v1869_v21 = vor.u32 %v2076_v19, %v1868_v18  ;;  %v2100_v22 = vld [vmem:[#allocation2 + $0x2d8] sm:$0xf0]  ;;  %v1760_v26 = vld [vmem:[#allocation2 + $0x138] sm:$0xf]  ;;  %v2049_v27 = vld [vmem:[#allocation2 + $0x140] sm:$0xf0]  ;;  %v1665_v29 = vor.u32 %v2025_v24, %v1664_v23 }
  0x38   :  { %v1965_v25 = vor.u32 %v2100_v22, %v1964_v20  ;;  %v1856_v28 = vld [vmem:[#allocation2 + $0x1f8] sm:$0xf]  ;;  %839 = vmatpush.bf16.msra.mxu0 %v1677_v16  ;;  %v2073_v30 = vld [vmem:[#allocation2 + $0x200] sm:$0xf0]  ;;  %v1761_v33 = vor.u32 %v2049_v27, %v1760_v26  ;;  %v1652_v35 = vld [vmem:[#allocation2 + $0x60] sm:$0xf] }
  0x39   :  { %v1952_v31 = vld [vmem:[#allocation2 + $0x2b8] sm:$0xf]  ;;  %v2097_v32 = vld [vmem:[#allocation2 + $0x2c0] sm:$0xf0]  ;;  %852 = vmatpush.bf16.msra.mxu1 %v1773_v17  ;;  %v1857_v34 = vor.u32 %v2073_v30, %v1856_v28  ;;  %v2022_v36 = vld [vmem:[#allocation2 + $0x68] sm:$0xf0] }
  0x3a   :  { %865 = vmatpush.bf16.msra.mxu2 %v1869_v21  ;;  %v1748_v37 = vld [vmem:[#allocation2 + $0x120] sm:$0xf]  ;;  %v1953_v38 = vor.u32 %v2097_v32, %v1952_v31  ;;  %v2046_v39 = vld [vmem:[#allocation2 + $0x128] sm:$0xf0]  ;;  %v1653_v44 = vor.u32 %v2022_v36, %v1652_v35  ;;  %v1640_v47 = vld [vmem:[#allocation2 + $0x48] sm:$0xf] }
  0x3b   :  { %878 = vmatpush.bf16.msra.mxu3 %v1965_v25  ;;  %v1844_v40 = vld [vmem:[#allocation2 + $0x1e0] sm:$0xf]  ;;  %v2070_v41 = vld [vmem:[#allocation2 + $0x1e8] sm:$0xf0]  ;;  %v1749_v45 = vor.u32 %v2046_v39, %v1748_v37  ;;  %v2019_v48 = vld [vmem:[#allocation2 + $0x50] sm:$0xf0] }
  0x3c   :  { %v1940_v42 = vld [vmem:[#allocation2 + $0x2a0] sm:$0xf]  ;;  %v2094_v43 = vld [vmem:[#allocation2 + $0x2a8] sm:$0xf0]  ;;  %840 = vmatpush.bf16.msra.mxu0 %v1665_v29  ;;  %v1845_v46 = vor.u32 %v2070_v41, %v1844_v40  ;;  %v1736_v49 = vld [vmem:[#allocation2 + $0x108] sm:$0xf]  ;;  %v1641_v56 = vor.u32 %v2019_v48, %v1640_v47 }
  0x3d   :  { %853 = vmatpush.bf16.msra.mxu1 %v1761_v33  ;;  %v1941_v50 = vor.u32 %v2094_v43, %v1940_v42  ;;  %v2043_v51 = vld [vmem:[#allocation2 + $0x110] sm:$0xf0]  ;;  %v1832_v52 = vld [vmem:[#allocation2 + $0x1c8] sm:$0xf]  ;;  %v1628_v59 = vld [vmem:[#allocation2 + $0x30] sm:$0xf] }
  0x3e   :  { %866 = vmatpush.bf16.msra.mxu2 %v1857_v34  ;;  %v2067_v53 = vld [vmem:[#allocation2 + $0x1d0] sm:$0xf0]  ;;  %v1928_v54 = vld [vmem:[#allocation2 + $0x288] sm:$0xf]  ;;  %v1737_v57 = vor.u32 %v2043_v51, %v1736_v49  ;;  %v2016_v60 = vld [vmem:[#allocation2 + $0x38] sm:$0xf0] }
  0x3f   :  { %879 = vmatpush.bf16.msra.mxu3 %v1953_v38  ;;  %v2091_v55 = vld [vmem:[#allocation2 + $0x290] sm:$0xf0]  ;;  %v1833_v58 = vor.u32 %v2067_v53, %v1832_v52  ;;  %v1724_v61 = vld [vmem:[#allocation2 + $0xf0] sm:$0xf]  ;;  %v2040_v63 = vld [vmem:[#allocation2 + $0xf8] sm:$0xf0]  ;;  %v1629_v4 = vor.u32 %v2016_v60, %v1628_v59 }
  0x40   :  { %841 = vmatpush.bf16.msra.mxu0 %v1653_v44  ;;  %v1929_v62 = vor.u32 %v2091_v55, %v1928_v54  ;;  %v1820_v0 = vld [vmem:[#allocation2 + $0x1b0] sm:$0xf]  ;;  %v2064_v1 = vld [vmem:[#allocation2 + $0x1b8] sm:$0xf0]  ;;  %v1725_v5 = vor.u32 %v2040_v63, %v1724_v61  ;;  %v1616_v7 = vld [vmem:[#allocation2 + $0x18] sm:$0xf] }
  0x41   :  { %854 = vmatpush.bf16.msra.mxu1 %v1749_v45  ;;  %v1916_v2 = vld [vmem:[#allocation2 + $0x270] sm:$0xf]  ;;  %v2088_v3 = vld [vmem:[#allocation2 + $0x278] sm:$0xf0]  ;;  %v1821_v6 = vor.u32 %v2064_v1, %v1820_v0  ;;  %v2013_v8 = vld [vmem:[#allocation2 + $0x20] sm:$0xf0] }
  0x42   :  { %867 = vmatpush.bf16.msra.mxu2 %v1845_v46  ;;  %v1712_v9 = vld [vmem:[#allocation2 + $0xd8] sm:$0xf]  ;;  %v1917_v10 = vor.u32 %v2088_v3, %v1916_v2  ;;  %v2037_v11 = vld [vmem:[#allocation2 + $0xe0] sm:$0xf0]  ;;  %v1617_v16 = vor.u32 %v2013_v8, %v1616_v7  ;;  %v1604_v17 = vld [vmem:[#allocation2] sm:$0xf] }
  0x43   :  { %880 = vmatpush.bf16.msra.mxu3 %v1941_v50  ;;  %v1808_v12 = vld [vmem:[#allocation2 + $0x198] sm:$0xf]  ;;  %v2061_v13 = vld [vmem:[#allocation2 + $0x1a0] sm:$0xf0]  ;;  %v2010_v18 = vld [vmem:[#allocation2 + $0x8] sm:$0xf0]  ;;  %v1713_v19 = vor.u32 %v2037_v11, %v1712_v9 }
  0x44   :  { %842 = vmatpush.bf16.msra.mxu0 %v1641_v56  ;;  %v1904_v14 = vld [vmem:[#allocation2 + $0x258] sm:$0xf]  ;;  %v2085_v15 = vld [vmem:[#allocation2 + $0x260] sm:$0xf0]  ;;  %v1809_v20 = vor.u32 %v2061_v13, %v1808_v12  ;;  %v1700_v21 = vld [vmem:[#allocation2 + $0xc0] sm:$0xf]  ;;  %v1605_v31 = vor.u32 %v2010_v18, %v1604_v17 }
  0x45   :  { %855 = vmatpush.bf16.msra.mxu1 %v1737_v57  ;;  %v2034_v22 = vld [vmem:[#allocation2 + $0xc8] sm:$0xf0]  ;;  %v1796_v23 = vld [vmem:[#allocation2 + $0x180] sm:$0xf]  ;;  %v1905_v24 = vor.u32 %v2085_v15, %v1904_v14  ;;  %v1690_v29 = vld [vmem:[#allocation2 + $0xb4] sm:$0xf0] }
  0x46   :  { %868 = vmatpush.bf16.msra.mxu2 %v1833_v58  ;;  %v2058_v25 = vld [vmem:[#allocation2 + $0x188] sm:$0xf0]  ;;  %v1892_v26 = vld [vmem:[#allocation2 + $0x240] sm:$0xf]  ;;  %v1786_v32 = vld [vmem:[#allocation2 + $0x174] sm:$0xf0]  ;;  %v1701_v35 = vor.u32 %v2034_v22, %v1700_v21 }
  0x47   :  { %881 = vmatpush.bf16.msra.mxu3 %v1929_v62  ;;  %v2082_v27 = vld [vmem:[#allocation2 + $0x248] sm:$0xf0]  ;;  %v1882_v34 = vld [vmem:[#allocation2 + $0x234] sm:$0xf0]  ;;  %v1797_v36 = vor.u32 %v2058_v25, %v1796_v23  ;;  %v2027_v43 = vld [vmem:[#allocation2 + $0x94] sm:$0xf] }
  0x48   :  { %843 = vmatpush.bf16.msra.mxu0 %v1629_v4  ;;  %v2030_v28 = vld [vmem:[#allocation2 + $0xac] sm:$0xf]  ;;  %v1978_v38 = vld [vmem:[#allocation2 + $0x2f4] sm:$0xf0]  ;;  %v1893_v39 = vor.u32 %v2082_v27, %v1892_v26  ;;  %v1678_v44 = vld [vmem:[#allocation2 + $0x9c] sm:$0xf0] }
  0x49   :  { %856 = vmatpush.bf16.msra.mxu1 %v1725_v5  ;;  %v2054_v30 = vld [vmem:[#allocation2 + $0x16c] sm:$0xf]  ;;  %v1693_v40 = vor.u32 %v2030_v28, %v1690_v29  ;;  %v2051_v45 = vld [vmem:[#allocation2 + $0x154] sm:$0xf]  ;;  %v1774_v47 = vld [vmem:[#allocation2 + $0x15c] sm:$0xf0]  ;;  %v1681_v53 = vor.u32 %v2027_v43, %v1678_v44 }
  0x4a   :  { %869 = vmatpush.bf16.msra.mxu2 %v1821_v6  ;;  %v2078_v33 = vld [vmem:[#allocation2 + $0x22c] sm:$0xf]  ;;  %v1789_v41 = vor.u32 %v2054_v30, %v1786_v32  ;;  %v2075_v48 = vld [vmem:[#allocation2 + $0x214] sm:$0xf]  ;;  %v1870_v49 = vld [vmem:[#allocation2 + $0x21c] sm:$0xf0]  ;;  %v1777_v57 = vor.u32 %v2051_v45, %v1774_v47 }
  0x4b   :  { %882 = vmatpush.bf16.msra.mxu3 %v1917_v10  ;;  %v2102_v37 = vld [vmem:[#allocation2 + $0x2ec] sm:$0xf]  ;;  %v1885_v42 = vor.u32 %v2078_v33, %v1882_v34  ;;  %v2099_v50 = vld [vmem:[#allocation2 + $0x2d4] sm:$0xf]  ;;  %v1966_v51 = vld [vmem:[#allocation2 + $0x2dc] sm:$0xf0]  ;;  %v1873_v58 = vor.u32 %v2075_v48, %v1870_v49 }
  0x4c   :  { %844 = vmatpush.bf16.msra.mxu0 %v1617_v16  ;;  %v1981_v46 = vor.u32 %v2102_v37, %v1978_v38  ;;  %s2687_s25 = sld [smem:[#allocation23_spill]]  ;;  %v2024_v54 = vld [vmem:[#allocation2 + $0x7c] sm:$0xf]  ;;  %v1666_v59 = vld [vmem:[#allocation2 + $0x84] sm:$0xf0]  ;;  %v1969_v62 = vor.u32 %v2099_v50, %v1966_v51  ;;  %vm1111_vm0 = vcmask 193536  }
  0x4d   :  { %857 = vmatpush.bf16.msra.mxu1 %v1713_v19  ;;  %v2048_v60 = vld [vmem:[#allocation2 + $0x13c] sm:$0xf]  ;;  %v1762_v61 = vld [vmem:[#allocation2 + $0x144] sm:$0xf0]  ;;  %v1669_v8 = vor.u32 %v2024_v54, %v1666_v59  ;;  %v2021_v11 = vld [vmem:[#allocation2 + $0x64] sm:$0xf] }
  0x4e   :  { %870 = vmatpush.bf16.msra.mxu2 %v1809_v20  ;;  %v2072_v63 = vld [vmem:[#allocation2 + $0x1fc] sm:$0xf]  ;;  %v1858_v0 = vld [vmem:[#allocation2 + $0x204] sm:$0xf0]  ;;  %v1765_v9 = vor.u32 %v2048_v60, %v1762_v61  ;;  %v1654_v12 = vld [vmem:[#allocation2 + $0x6c] sm:$0xf0] }
  0x4f   :  { %883 = vmatpush.bf16.msra.mxu3 %v1905_v24  ;;  %v2096_v3 = vld [vmem:[#allocation2 + $0x2bc] sm:$0xf]  ;;  %v1954_v4 = vld [vmem:[#allocation2 + $0x2c4] sm:$0xf0]  ;;  %v1861_v10 = vor.u32 %v2072_v63, %v1858_v0  ;;  %v2045_v13 = vld [vmem:[#allocation2 + $0x124] sm:$0xf]  ;;  %v1657_v22 = vor.u32 %v2021_v11, %v1654_v12 }
  0x50   :  { %845 = vmatpush.bf16.msra.mxu0 %v1605_v31  ;;  %v1957_v16 = vor.u32 %v2096_v3, %v1954_v4  ;;  %v1750_v17 = vld [vmem:[#allocation2 + $0x12c] sm:$0xf0]  ;;  %v2069_v18 = vld [vmem:[#allocation2 + $0x1e4] sm:$0xf]  ;;  %v2018_v25 = vld [vmem:[#allocation2 + $0x4c] sm:$0xf] }
  0x51   :  { %858 = vmatpush.bf16.msra.mxu1 %v1701_v35  ;;  %v1846_v19 = vld [vmem:[#allocation2 + $0x1ec] sm:$0xf0]  ;;  %v2093_v20 = vld [vmem:[#allocation2 + $0x2a4] sm:$0xf]  ;;  %v1753_v23 = vor.u32 %v2045_v13, %v1750_v17  ;;  %v1642_v26 = vld [vmem:[#allocation2 + $0x54] sm:$0xf0] }
  0x52   :  { %871 = vmatpush.bf16.msra.mxu2 %v1797_v36  ;;  %v183_v52 = vld [vmem:[%s2687_s25 + $0x8] sm:$0x77]  ;;  %v182_v2 = vld [vmem:[%s2687_s25] sm:$0x77]  ;;  %v1942_v21 = vld [vmem:[#allocation2 + $0x2ac] sm:$0xf0]  ;;  %v1849_v24 = vor.u32 %v2069_v18, %v1846_v19  ;;  %v1645_v34 = vor.u32 %v2018_v25, %v1642_v26 }
  0x53   :  { %884 = vmatpush.bf16.msra.mxu3 %v1893_v39  ;;  %v316_v55 = vunpack.c.l.b16 %v183_v52  ;;  %v317_v56 = vunpack.c.h.b16 %v183_v52  ;;  %v314_v6 = vunpack.c.l.b16 %v182_v2  ;;  %v315_v7 = vunpack.c.h.b16 %v182_v2  ;;  %v2042_v27 = vld [vmem:[#allocation2 + $0x10c] sm:$0xf]  ;;  %v1738_v29 = vld [vmem:[#allocation2 + $0x114] sm:$0xf0]  ;;  %v2015_v37 = vld [vmem:[#allocation2 + $0x34] sm:$0xf] }
  0x54   :  { %890 = vmatpush.bf16.msrb.mxu0 %v1693_v40  ;;  %v1945_v28 = vor.u32 %v2093_v20, %v1942_v21  ;;  %v2066_v30 = vld [vmem:[#allocation2 + $0x1cc] sm:$0xf]  ;;  %v1834_v31 = vld [vmem:[#allocation2 + $0x1d4] sm:$0xf0]  ;;  %v1741_v35 = vor.u32 %v2042_v27, %v1738_v29  ;;  %v1630_v38 = vld [vmem:[#allocation2 + $0x3c] sm:$0xf0] }
  0x55   :  { %903 = vmatpush.bf16.msrb.mxu1 %v1789_v41  ;;  %v2514_v1 = vpack.c.b16 %v316_v55, %v316_v55  ;;  %v2519_v5 = vpack.c.b16 %v317_v56, %v317_v56  ;;  %v2522_v14 = vpack.c.b16 %v314_v6, %v314_v6  ;;  %v2524_v15 = vpack.c.b16 %v315_v7, %v315_v7  ;;  %v2090_v32 = vld [vmem:[#allocation2 + $0x28c] sm:$0xf]  ;;  %v1930_v33 = vld [vmem:[#allocation2 + $0x294] sm:$0xf0]  ;;  %v2039_v39 = vld [vmem:[#allocation2 + $0xf4] sm:$0xf] }
  0x56   :  { %916 = vmatpush.bf16.msrb.mxu2 %v1885_v42  ;;  %v1837_v36 = vor.u32 %v2066_v30, %v1834_v31  ;;  %v1933_v40 = vor.u32 %v2090_v32, %v1930_v33  ;;  %v1726_v41 = vld [vmem:[#allocation2 + $0xfc] sm:$0xf0]  ;;  %v2063_v42 = vld [vmem:[#allocation2 + $0x1b4] sm:$0xf]  ;;  %v2012_v49 = vld [vmem:[#allocation2 + $0x1c] sm:$0xf] }
  0x57   :  { %929 = vmatpush.bf16.msrb.mxu3 %v1981_v46  ;;  %872 = vmatmul.bf16.vlgmr.msra.gmra.mxu2 %v2514_v1  ;;  %v1822_v43 = vld [vmem:[#allocation2 + $0x1bc] sm:$0xf0]  ;;  %v2087_v44 = vld [vmem:[#allocation2 + $0x274] sm:$0xf]  ;;  %v1633_v46 = vor.u32 %v2015_v37, %v1630_v38  ;;  %v1729_v47 = vor.u32 %v2039_v39, %v1726_v41  ;;  %v1618_v50 = vld [vmem:[#allocation2 + $0x24] sm:$0xf0] }
  0x58   :  { %891 = vmatpush.bf16.msrb.mxu0 %v1681_v53  ;;  %885 = vmatmul.bf16.vlgmr.msra.gmra.mxu3 %v2519_v5  ;;  %v1918_v45 = vld [vmem:[#allocation2 + $0x27c] sm:$0xf0]  ;;  %v1825_v48 = vor.u32 %v2063_v42, %v1822_v43  ;;  %v2036_v51 = vld [vmem:[#allocation2 + $0xdc] sm:$0xf]  ;;  %v1714_v53 = vld [vmem:[#allocation2 + $0xe4] sm:$0xf0] }
  0x59   :  { %904 = vmatpush.bf16.msrb.mxu1 %v1777_v57  ;;  %846 = vmatmul.bf16.vlgmr.msra.gmra.mxu0 %v2522_v14  ;;  %v1921_v52 = vor.u32 %v2087_v44, %v1918_v45  ;;  %v2060_v54 = vld [vmem:[#allocation2 + $0x19c] sm:$0xf]  ;;  %v1810_v55 = vld [vmem:[#allocation2 + $0x1a4] sm:$0xf0]  ;;  %v2009_v59 = vld [vmem:[#allocation2 + $0x4] sm:$0xf]  ;;  %v1717_v61 = vor.u32 %v2036_v51, %v1714_v53 }
  0x5a   :  { %917 = vmatpush.bf16.msrb.mxu2 %v1873_v58  ;;  %859 = vmatmul.bf16.vlgmr.msra.gmra.mxu1 %v2524_v15  ;;  %v2084_v56 = vld [vmem:[#allocation2 + $0x25c] sm:$0xf]  ;;  %v1906_v57 = vld [vmem:[#allocation2 + $0x264] sm:$0xf0]  ;;  %v1621_v58 = vor.u32 %v2012_v49, %v1618_v50  ;;  %v1606_v60 = vld [vmem:[#allocation2 + $0xc] sm:$0xf0] }
  0x5b   :  { %930 = vmatpush.bf16.msrb.mxu3 %v1969_v62  ;;  %v1813_v62 = vor.u32 %v2060_v54, %v1810_v55  ;;  %v2033_v63 = vld [vmem:[#allocation2 + $0xc4] sm:$0xf]  ;;  %v1702_v0 = vld [vmem:[#allocation2 + $0xcc] sm:$0xf0]  ;;  %v1909_v3 = vor.u32 %v2084_v56, %v1906_v57  ;;  %v1609_v11 = vor.u32 %v2009_v59, %v1606_v60  ;;  %v2056_v12 = vld [vmem:[#allocation2 + $0x178] sm:$0xf0] }
  0x5c   :  { %892 = vmatpush.bf16.msrb.mxu0 %v1669_v8  ;;  %v2057_v2 = vld [vmem:[#allocation2 + $0x184] sm:$0xf]  ;;  %v1798_v4 = vld [vmem:[#allocation2 + $0x18c] sm:$0xf0]  ;;  %v1705_v17 = vor.u32 %v2033_v63, %v1702_v0  ;;  %v2104_v20 = vld [vmem:[#allocation2 + $0x2f8] sm:$0xf0] }
  0x5d   :  { %905 = vmatpush.bf16.msrb.mxu1 %v1765_v9  ;;  %v2081_v6 = vld [vmem:[#allocation2 + $0x244] sm:$0xf]  ;;  %v1894_v7 = vld [vmem:[#allocation2 + $0x24c] sm:$0xf0]  ;;  %v2032_v9 = vld [vmem:[#allocation2 + $0xb8] sm:$0xf0]  ;;  %v1801_v18 = vor.u32 %v2057_v2, %v1798_v4 }
  0x5e   :  { %918 = vmatpush.bf16.msrb.mxu2 %v1861_v10  ;;  %v1696_v8 = vld [vmem:[#allocation2 + $0xb0] sm:$0xf]  ;;  %v1897_v21 = vor.u32 %v2081_v6, %v1894_v7  ;;  %v1684_v25 = vld [vmem:[#allocation2 + $0x98] sm:$0xf]  ;;  %v2029_v26 = vld [vmem:[#allocation2 + $0xa0] sm:$0xf0] }
  0x5f   :  { %931 = vmatpush.bf16.msrb.mxu3 %v1957_v16  ;;  %v1792_v10 = vld [vmem:[#allocation2 + $0x170] sm:$0xf]  ;;  %v2080_v16 = vld [vmem:[#allocation2 + $0x238] sm:$0xf0]  ;;  %v1780_v27 = vld [vmem:[#allocation2 + $0x158] sm:$0xf] }
  0x60   :  { %893 = vmatpush.bf16.msrb.mxu0 %v1657_v22  ;;  %v1888_v13 = vld [vmem:[#allocation2 + $0x230] sm:$0xf]  ;;  %v1697_v22 = vor.u32 %v2032_v9, %v1696_v8  ;;  %v2053_v29 = vld [vmem:[#allocation2 + $0x160] sm:$0xf0]  ;;  %v1876_v30 = vld [vmem:[#allocation2 + $0x218] sm:$0xf] }
  0x61   :  { %906 = vmatpush.bf16.msrb.mxu1 %v1753_v23  ;;  %v1984_v19 = vld [vmem:[#allocation2 + $0x2f0] sm:$0xf]  ;;  %v1793_v23 = vor.u32 %v2056_v12, %v1792_v10  ;;  %v2077_v31 = vld [vmem:[#allocation2 + $0x220] sm:$0xf0]  ;;  %v1972_v32 = vld [vmem:[#allocation2 + $0x2d8] sm:$0xf] }
  0x62   :  { %919 = vmatpush.bf16.msrb.mxu2 %v1849_v24  ;;  %v1889_v24 = vor.u32 %v2080_v16, %v1888_v13  ;;  %v2101_v33 = vld [vmem:[#allocation2 + $0x2e0] sm:$0xf0]  ;;  %v1672_v37 = vld [vmem:[#allocation2 + $0x80] sm:$0xf]  ;;  %v2026_v38 = vld [vmem:[#allocation2 + $0x88] sm:$0xf0] }
  0x63   :  { %932 = vmatpush.bf16.msrb.mxu3 %v1945_v28  ;;  %v1985_v28 = vor.u32 %v2104_v20, %v1984_v19  ;;  %v1768_v39 = vld [vmem:[#allocation2 + $0x140] sm:$0xf]  ;;  %v2050_v41 = vld [vmem:[#allocation2 + $0x148] sm:$0xf0]  ;;  %v1660_v49 = vld [vmem:[#allocation2 + $0x68] sm:$0xf] }
  0x64   :  { %894 = vmatpush.bf16.msrb.mxu0 %v1645_v34  ;;  %v1685_v34 = vor.u32 %v2029_v26, %v1684_v25  ;;  %v1864_v42 = vld [vmem:[#allocation2 + $0x200] sm:$0xf]  ;;  %v2074_v43 = vld [vmem:[#allocation2 + $0x208] sm:$0xf0]  ;;  %v2023_v50 = vld [vmem:[#allocation2 + $0x70] sm:$0xf0] }
  0x65   :  { %907 = vmatpush.bf16.msrb.mxu1 %v1741_v35  ;;  %v1781_v35 = vor.u32 %v2053_v29, %v1780_v27  ;;  %v1960_v44 = vld [vmem:[#allocation2 + $0x2c0] sm:$0xf]  ;;  %v2098_v45 = vld [vmem:[#allocation2 + $0x2c8] sm:$0xf0]  ;;  %v1756_v51 = vld [vmem:[#allocation2 + $0x128] sm:$0xf] }
  0x66   :  { %920 = vmatpush.bf16.msrb.mxu2 %v1837_v36  ;;  %v1877_v36 = vor.u32 %v2077_v31, %v1876_v30  ;;  %v2047_v53 = vld [vmem:[#allocation2 + $0x130] sm:$0xf0]  ;;  %v1852_v54 = vld [vmem:[#allocation2 + $0x1e8] sm:$0xf]  ;;  %v1744_v63 = vld [vmem:[#allocation2 + $0x110] sm:$0xf] }
  0x67   :  { %933 = vmatpush.bf16.msrb.mxu3 %v1933_v40  ;;  %v1973_v40 = vor.u32 %v2101_v33, %v1972_v32  ;;  %v2071_v55 = vld [vmem:[#allocation2 + $0x1f0] sm:$0xf0]  ;;  %v1948_v56 = vld [vmem:[#allocation2 + $0x2a8] sm:$0xf]  ;;  %v1757_v59 = vor.u32 %v2047_v53, %v1756_v51  ;;  %v2044_v2 = vld [vmem:[#allocation2 + $0x118] sm:$0xf0] }
  0x68   :  { %895 = vmatpush.bf16.msrb.mxu0 %v1633_v46  ;;  %v1673_v46 = vor.u32 %v2026_v38, %v1672_v37  ;;  %v2095_v57 = vld [vmem:[#allocation2 + $0x2b0] sm:$0xf0]  ;;  %v1853_v60 = vor.u32 %v2071_v55, %v1852_v54  ;;  %v2068_v4 = vld [vmem:[#allocation2 + $0x1d8] sm:$0xf0]  ;;  %v1936_v6 = vld [vmem:[#allocation2 + $0x290] sm:$0xf]  ;;  %v1745_v9 = vor.u32 %v2044_v2, %v1744_v63 }
  0x69   :  { %908 = vmatpush.bf16.msrb.mxu1 %v1729_v47  ;;  %v1769_v47 = vor.u32 %v2050_v41, %v1768_v39  ;;  %v1949_v0 = vor.u32 %v2095_v57, %v1948_v56  ;;  %v2092_v7 = vld [vmem:[#allocation2 + $0x298] sm:$0xf0]  ;;  %v2017_v12 = vld [vmem:[#allocation2 + $0x40] sm:$0xf0]  ;;  %v1732_v13 = vld [vmem:[#allocation2 + $0xf8] sm:$0xf] }
  0x6a   :  { %921 = vmatpush.bf16.msrb.mxu2 %v1825_v48  ;;  %v1865_v48 = vor.u32 %v2074_v43, %v1864_v42  ;;  %v1937_v16 = vor.u32 %v2092_v7, %v1936_v6  ;;  %v2065_v19 = vld [vmem:[#allocation2 + $0x1c0] sm:$0xf0]  ;;  %v1924_v20 = vld [vmem:[#allocation2 + $0x278] sm:$0xf]  ;;  %v1624_v25 = vld [vmem:[#allocation2 + $0x20] sm:$0xf] }
  0x6b   :  { %934 = vmatpush.bf16.msrb.mxu3 %v1921_v52  ;;  %v1961_v52 = vor.u32 %v2098_v45, %v1960_v44  ;;  %v2014_v26 = vld [vmem:[#allocation2 + $0x28] sm:$0xf0]  ;;  %v1720_v27 = vld [vmem:[#allocation2 + $0xe0] sm:$0xf]  ;;  %v1612_v37 = vld [vmem:[#allocation2 + $0x8] sm:$0xf] }
  0x6c   :  { %896 = vmatpush.bf16.msrb.mxu0 %v1621_v58  ;;  %v1661_v58 = vor.u32 %v2023_v50, %v1660_v49  ;;  %v2038_v29 = vld [vmem:[#allocation2 + $0xe8] sm:$0xf0]  ;;  %v1816_v30 = vld [vmem:[#allocation2 + $0x1a0] sm:$0xf]  ;;  %v2011_v38 = vld [vmem:[#allocation2 + $0x10] sm:$0xf0] }
  0x6d   :  { %909 = vmatpush.bf16.msrb.mxu1 %v1717_v61  ;;  %v1648_v61 = vld [vmem:[#allocation2 + $0x50] sm:$0xf]  ;;  %v2062_v31 = vld [vmem:[#allocation2 + $0x1a8] sm:$0xf0]  ;;  %v1912_v32 = vld [vmem:[#allocation2 + $0x260] sm:$0xf] }
  0x6e   :  { %922 = vmatpush.bf16.msrb.mxu2 %v1813_v62  ;;  %v2020_v62 = vld [vmem:[#allocation2 + $0x58] sm:$0xf0]  ;;  %v2086_v33 = vld [vmem:[#allocation2 + $0x268] sm:$0xf0]  ;;  %v1708_v39 = vld [vmem:[#allocation2 + $0xc8] sm:$0xf] }
  0x6f   :  { %935 = vmatpush.bf16.msrb.mxu3 %v1909_v3  ;;  %v1840_v3 = vld [vmem:[#allocation2 + $0x1d0] sm:$0xf]  ;;  %v1649_v8 = vor.u32 %v2020_v62, %v1648_v61  ;;  %v2035_v41 = vld [vmem:[#allocation2 + $0xd0] sm:$0xf0]  ;;  %v1804_v42 = vld [vmem:[#allocation2 + $0x188] sm:$0xf] }
  0x70   :  { %897 = vmatpush.bf16.msrb.mxu0 %v1609_v11  ;;  %v1841_v10 = vor.u32 %v2068_v4, %v1840_v3  ;;  %v1636_v11 = vld [vmem:[#allocation2 + $0x38] sm:$0xf]  ;;  %v2059_v43 = vld [vmem:[#allocation2 + $0x190] sm:$0xf0]  ;;  %v1900_v44 = vld [vmem:[#allocation2 + $0x248] sm:$0xf] }
  0x71   :  { %910 = vmatpush.bf16.msrb.mxu1 %v1705_v17  ;;  %v2041_v17 = vld [vmem:[#allocation2 + $0x100] sm:$0xf0]  ;;  %v2083_v45 = vld [vmem:[#allocation2 + $0x250] sm:$0xf0]  ;;  %v1018_v50 = vld [vmem:[#allocation5 + $0x78] sm:$0xff]  ;;  %s2688_s0 = sld [smem:[#allocation25_spill]] }
  0x72   :  { %923 = vmatpush.bf16.msrb.mxu2 %v1801_v18  ;;  %v1828_v18 = vld [vmem:[#allocation2 + $0x1b8] sm:$0xf]  ;;  %v1901_v49 = vor.u32 %v2083_v45, %v1900_v44  ;;  %v1033_v53 = vld [vmem:[#allocation5 + $0xf0] sm:$0xff]  ;;  %v1016_v54 = vld [vmem:[#allocation5 + $0x68] sm:$0xff]  ;;  %vm1116_vm1 = vcmask 195584   ;;  %vm1171_vm2 = vcmask 1046528  }
  0x73   :  { %936 = vmatpush.bf16.msrb.mxu3 %v1897_v21  ;;  %898 = vmatmul.bf16.vlgmr.msrb.gmra.mxu0 %v2522_v14  ;;  %v2089_v21 = vld [vmem:[#allocation2 + $0x280] sm:$0xf0]  ;;  %v1034_v51 = vld [vmem:[#allocation5 + $0xf8] sm:$0xff]  ;;  %v1032_v56 = vld [vmem:[#allocation5 + $0xe8] sm:$0xff]  ;;  %vm1167_vm4 = vcmask 187392   ;;  %vm1211_vm6 = vcmask 785408  }
  0x74   :  { %942 = vmatpush.bf16.msra.mxu0 %v1697_v22  ;;  %911 = vmatmul.bf16.vlgmr.msrb.gmra.mxu1 %v2524_v15  ;;  %v1637_v22 = vor.u32 %v2017_v12, %v1636_v11  ;;  %v1015_v55 = vld [vmem:[#allocation5 + $0x60] sm:$0xff]  ;;  %v1014_v57 = vld [vmem:[#allocation5 + $0x58] sm:$0xff]  ;;  %v1009_v63 = vld [vmem:[#allocation5 + $0x30] sm:$0xff]  ;;  %vm1277_vm7 = vcmask 1041408   ;;  %vm1273_vm8 = vcmask 80896   ;;  %vm1265_vm9 = vcmask 74752  }
  0x75   :  { %955 = vmatpush.bf16.msra.mxu1 %v1793_v23  ;;  %924 = vmatmul.bf16.vlgmr.msrb.gmra.mxu2 %v2514_v1  ;;  %v1733_v23 = vor.u32 %v2041_v17, %v1732_v13  ;;  %v1010_v61 = vld [vmem:[#allocation5 + $0x38] sm:$0xff]  ;;  %v1027_v62 = vld [vmem:[#allocation5 + $0xc0] sm:$0xff]  ;;  %v1008_v2 = vld [vmem:[#allocation5 + $0x28] sm:$0xff]  ;;  %vm1518_vm10 = vcmask 1043456   ;;  %vm1531_vm11 = vcmask 1045504   ;;  %s2370_s27 = smov [#allocation16]  }
  0x76   :  { %968 = vmatpush.bf16.msra.mxu2 %v1889_v24  ;;  %937 = vmatmul.bf16.vlgmr.msrb.gmra.mxu3 %v2519_v5  ;;  %v1829_v24 = vor.u32 %v2065_v19, %v1828_v18  ;;  %v1025_v3 = vld [vmem:[#allocation5 + $0xb0] sm:$0xff]  ;;  %v1007_v4 = vld [vmem:[#allocation5 + $0x20] sm:$0xff]  ;;  %v1024_v6 = vld [vmem:[#allocation5 + $0xa8] sm:$0xff]  ;;  %s1570_s29 = sshll.u32 %s2370_s27, 4  ;;  %vm1553_vm13 = vcmask 5120   ;;  %s1571_s29 = int_to_ptr.vmem [resolvable:$true] %s1570_s29 }
  0x77   :  { %981 = vmatpush.bf16.msra.mxu3 %v1985_v28  ;;  %v1925_v28 = vor.u32 %v2089_v21, %v1924_v20  ;;  %v1006_v7 = vld [vmem:[#allocation5 + $0x18] sm:$0xff]  ;;  %v1004_v17 = vld [vmem:[#allocation5 + $0x8] sm:$0xff]  ;;  %v1021_v19 = vld [vmem:[#allocation5 + $0x90] sm:$0xff] }
  0x78   :  { %943 = vmatpush.bf16.msra.mxu0 %v1685_v34  ;;  %v1625_v34 = vor.u32 %v2014_v26, %v1624_v25  ;;  %v1022_v13 = vld [vmem:[#allocation5 + $0x98] sm:$0xff]  ;;  %v1003_v20 = vld [vmem:[#allocation5] sm:$0xff] }
  0x79   :  { %956 = vmatpush.bf16.msra.mxu1 %v1781_v35  ;;  %v1721_v35 = vor.u32 %v2038_v29, %v1720_v27  ;;  %v179_v25 = vld [vmem:[%s2688_s0] sm:$0x3f] }
  0x7a   :  { %969 = vmatpush.bf16.msra.mxu2 %v1877_v36  ;;  %v1817_v36 = vor.u32 %v2062_v31, %v1816_v30  ;;  %v1019_v27 = vld [vmem:[#allocation5 + $0x80] sm:$0xff]  ;;  %v1048_v31 = vld [vmem:[#allocation5 + $0x168] sm:$0xff] }
  0x7b   :  { %982 = vmatpush.bf16.msra.mxu3 %v1973_v40  ;;  %v1913_v40 = vor.u32 %v2086_v33, %v1912_v32 }
  0x7c   :  { %944 = vmatpush.bf16.msra.mxu0 %v1673_v46  ;;  %v1613_v46 = vor.u32 %v2011_v38, %v1612_v37  ;;  %v1045_v37 = vld [vmem:[#allocation5 + $0x150] sm:$0xff]  ;;  %v1044_v38 = vld [vmem:[#allocation5 + $0x148] sm:$0xff] }
  0x7d   :  { %957 = vmatpush.bf16.msra.mxu1 %v1769_v47  ;;  %v1709_v47 = vor.u32 %v2035_v41, %v1708_v39  ;;  %v1043_v39 = vld [vmem:[#allocation5 + $0x140] sm:$0xff]  ;;  %v1041_v41 = vld [vmem:[#allocation5 + $0x130] sm:$0xff] }
  0x7e   :  { %970 = vmatpush.bf16.msra.mxu2 %v1865_v48  ;;  %v1805_v48 = vor.u32 %v2059_v43, %v1804_v42  ;;  %v1040_v42 = vld [vmem:[#allocation5 + $0x128] sm:$0xff] }
  0x7f   :  { %983 = vmatpush.bf16.msra.mxu3 %v1961_v52  ;;  %v1017_v52 = vld [vmem:[#allocation5 + $0x70] sm:$0xff] }
  0x80   :  { %945 = vmatpush.bf16.msra.mxu0 %v1661_v58  ;;  %v1031_v58 = vld [vmem:[#allocation5 + $0xe0] sm:$0xff] }
  0x81   :  { %958 = vmatpush.bf16.msra.mxu1 %v1757_v59  ;;  %v1030_v59 = vld [vmem:[#allocation5 + $0xd8] sm:$0xff] }
  0x82   :  { %971 = vmatpush.bf16.msra.mxu2 %v1853_v60  ;;  %v1029_v60 = vld [vmem:[#allocation5 + $0xd0] sm:$0xff] }
  0x83   :  { %984 = vmatpush.bf16.msra.mxu3 %v1949_v0  ;;  %v1026_v0 = vld [vmem:[#allocation5 + $0xb8] sm:$0xff] }
  0x84   :  { %946 = vmatpush.bf16.msra.mxu0 %v1649_v8 }
  0x85   :  { %959 = vmatpush.bf16.msra.mxu1 %v1745_v9  ;;  %v1023_v9 = vld [vmem:[#allocation5 + $0xa0] sm:$0xff] }
  0x86   :  { %972 = vmatpush.bf16.msra.mxu2 %v1841_v10  ;;  %v1005_v10 = vld [vmem:[#allocation5 + $0x10] sm:$0xff] }
  0x87   :  { %985 = vmatpush.bf16.msra.mxu3 %v1937_v16 }
  0x88   :  { %947 = vmatpush.bf16.msra.mxu0 %v1637_v22  ;;  %v1020_v22 = vld [vmem:[#allocation5 + $0x88] sm:$0xff] }
  0x89   :  { %960 = vmatpush.bf16.msra.mxu1 %v1733_v23 }
  0x8a   :  { %973 = vmatpush.bf16.msra.mxu2 %v1829_v24  ;;  %v1050_v24 = vld [vmem:[#allocation5 + $0x178] sm:$0xff] }
  0x8b   :  { %986 = vmatpush.bf16.msra.mxu3 %v1925_v28  ;;  %v1049_v28 = vld [vmem:[#allocation5 + $0x170] sm:$0xff] }
  0x8c   :  { %948 = vmatpush.bf16.msra.mxu0 %v1625_v34  ;;  %v1047_v34 = vld [vmem:[#allocation5 + $0x160] sm:$0xff] }
  0x8d   :  { %961 = vmatpush.bf16.msra.mxu1 %v1721_v35  ;;  %v1046_v35 = vld [vmem:[#allocation5 + $0x158] sm:$0xff] }
  0x8e   :  { %974 = vmatpush.bf16.msra.mxu2 %v1817_v36 }
  0x8f   :  { %987 = vmatpush.bf16.msra.mxu3 %v1913_v40  ;;  %v1042_v40 = vld [vmem:[#allocation5 + $0x138] sm:$0xff] }
  0x90   :  { %949 = vmatpush.bf16.msra.mxu0 %v1613_v46  ;;  %v1039_v46 = vld [vmem:[#allocation5 + $0x120] sm:$0xff] }
  0x91   :  { %962 = vmatpush.bf16.msra.mxu1 %v1709_v47 }
  0x92   :  { %975 = vmatpush.bf16.msra.mxu2 %v1805_v48  ;;  %v1038_v48 = vld [vmem:[#allocation5 + $0x118] sm:$0xff] }
  0x93   :  { %988 = vmatpush.bf16.msra.mxu3 %v1901_v49  ;;  %950 = vmatmul.bf16.vlgmr.msra.gmra.mxu0 %v2522_v14  ;;  %v1013_v14 = vld [vmem:[#allocation5 + $0x50] sm:$0xff] }
  0x94   :  { %1051 = vmatpush.msrb.mxu0 %v1018_v50  ;;  %963 = vmatmul.bf16.vlgmr.msra.gmra.mxu1 %v2524_v15  ;;  %v1012_v15 = vld [vmem:[#allocation5 + $0x48] sm:$0xff] }
  0x95   :  { %1071 = vmatpush.msrb.mxu1 %v1034_v51  ;;  %976 = vmatmul.bf16.vlgmr.msra.gmra.mxu2 %v2514_v1  ;;  %v1011_v1 = vld [vmem:[#allocation5 + $0x40] sm:$0xff]  ;;  %v1037_v51 = vld [vmem:[#allocation5 + $0x110] sm:$0xff] }
  0x96   :  { %989 = vmatmul.bf16.vlgmr.msra.gmra.mxu3 %v2519_v5  ;;  %1052 = vmatpush.msrb.mxu0 %v1017_v52  ;;  %v1028_v5 = vld [vmem:[#allocation5 + $0xc8] sm:$0xff] }
  0x97   :  { %1072 = vmatpush.msrb.mxu1 %v1033_v53  ;;  %1091 = vmatpush.msrb.mxu2 %v1050_v24  ;;  %v1205_v24 = vld [vmem:[#allocation10 + $0x50] sm:$0xff] }
  0x98   :  { %1053 = vmatpush.msrb.mxu0 %v1016_v54  ;;  %v180_v54 = vld [vmem:[%s2688_s0 + $0x8] sm:$0x3f] }
  0x99   :  { %1073 = vmatpush.msrb.mxu1 %v1032_v56  ;;  %1092 = vmatpush.msrb.mxu2 %v1049_v28  ;;  %v1036_v56 = vld [vmem:[#allocation5 + $0x108] sm:$0xff]  ;;  %v1203_v28 = vld [vmem:[#allocation10 + $0x40] sm:$0xff] }
  0x9a   :  { %1054 = vmatpush.msrb.mxu0 %v1015_v55 }
  0x9b   :  { %1074 = vmatpush.msrb.mxu1 %v1031_v58  ;;  %1093 = vmatpush.msrb.mxu2 %v1048_v31  ;;  %v1035_v58 = vld [vmem:[#allocation5 + $0x100] sm:$0xff] }
  0x9c   :  { %1055 = vmatpush.msrb.mxu0 %v1014_v57 }
  0x9d   :  { %1075 = vmatpush.msrb.mxu1 %v1030_v59  ;;  %1094 = vmatpush.msrb.mxu2 %v1047_v34  ;;  %v1201_v34 = vld [vmem:[#allocation10 + $0x30] sm:$0xff] }
  0x9e   :  { %1056 = vmatpush.msrb.mxu0 %v1013_v14 }
  0x9f   :  { %1076 = vmatpush.msrb.mxu1 %v1029_v60  ;;  %1095 = vmatpush.msrb.mxu2 %v1046_v35 }
  0xa0   :  { %1057 = vmatpush.msrb.mxu0 %v1012_v15 }
  0xa1   :  { %1077 = vmatpush.msrb.mxu1 %v1028_v5  ;;  %1096 = vmatpush.msrb.mxu2 %v1045_v37  ;;  %v1199_v37 = vld [vmem:[#allocation10 + $0x20] sm:$0xff] }
  0xa2   :  { %1058 = vmatpush.msrb.mxu0 %v1011_v1 }
  0xa3   :  { %1078 = vmatpush.msrb.mxu1 %v1027_v62  ;;  %1097 = vmatpush.msrb.mxu2 %v1044_v38  ;;  %v1198_v38 = vld [vmem:[#allocation10 + $0x18] sm:$0xff] }
  0xa4   :  { %1059 = vmatpush.msrb.mxu0 %v1010_v61 }
  0xa5   :  { %1079 = vmatpush.msrb.mxu1 %v1026_v0  ;;  %1098 = vmatpush.msrb.mxu2 %v1043_v39  ;;  %v1197_v39 = vld [vmem:[#allocation10 + $0x10] sm:$0xff] }
  0xa6   :  { %1060 = vmatpush.msrb.mxu0 %v1009_v63 }
  0xa7   :  { %1080 = vmatpush.msrb.mxu1 %v1025_v3  ;;  %1099 = vmatpush.msrb.mxu2 %v1042_v40 }
  0xa8   :  { %1061 = vmatpush.msrb.mxu0 %v1008_v2 }
  0xa9   :  { %1081 = vmatpush.msrb.mxu1 %v1024_v6  ;;  %1100 = vmatpush.msrb.mxu2 %v1041_v41 }
  0xaa   :  { %1062 = vmatpush.msrb.mxu0 %v1007_v4  ;;  %v181_v4 = vld [vmem:[%s2688_s0 + $0x10] sm:$0x3f] }
  0xab   :  { %1082 = vmatpush.msrb.mxu1 %v1023_v9  ;;  %1101 = vmatpush.msrb.mxu2 %v1040_v42 }
  0xac   :  { %1063 = vmatpush.msrb.mxu0 %v1006_v7 }
  0xad   :  { %1083 = vmatpush.msrb.mxu1 %v1022_v13  ;;  %1102 = vmatpush.msrb.mxu2 %v1039_v46 }
  0xae   :  { %1064 = vmatpush.msrb.mxu0 %v1005_v10  ;;  %v1115_v10 = vld [vmem:[#allocation7 + $0x10] sm:$0xff] }
  0xaf   :  { %1084 = vmatpush.msrb.mxu1 %v1021_v19  ;;  %1103 = vmatpush.msrb.mxu2 %v1038_v48 }
  0xb0   :  { %1065 = vmatpush.msrb.mxu0 %v1004_v17  ;;  %1133 = vmatpush.msrb.mxu3 %v1115_v10  ;;  %v1349_v10 = vld [vmem:[#allocation13 + $0x10] sm:$0xff] }
  0xb1   :  { %1085 = vmatpush.msrb.mxu1 %v1020_v22  ;;  %1104 = vmatpush.msrb.mxu2 %v1037_v51  ;;  %v1160_v22 = vld [vmem:[#allocation8] sm:$0xff]  ;;  %v1195_v51 = vld [vmem:[#allocation10] sm:$0xff] }
  0xb2   :  { %1066 = vmatpush.msrb.mxu0 %v1003_v20  ;;  %v1162_v20 = vld [vmem:[#allocation8 + $0x10] sm:$0x7f] }
  0xb3   :  { %1086 = vmatpush.msrb.mxu1 %v1019_v27  ;;  %1105 = vmatpush.msrb.mxu2 %v1036_v56 }
  0xb5   :  { %1106 = vmatpush.msrb.mxu2 %v1035_v58  ;;  %v1271_v58 = vld [vmem:[%s2670_s11 + $0x20] sm:$0x3] }
  0xb7   :  { %1993 = vmatpush.msk.msra.mxu2 %vm1277_vm7, %v1271_v58 }
  0xd6   :  { %v847_v8 = vpop.f32.mrf.mxu0 }
  0xd7   :  { %v860_v11 = vpop.f32.mrf.mxu1 }
  0xd8   :  { %v861_v12 = vadd.f32 %v860_v11, %v847_v8  ;;  %v1114_v11 = vld [vmem:[#allocation7 + $0x8] sm:$0xff] }
  0xd9   :  { %1134 = vmatpush.msrb.mxu3 %v1114_v11  ;;  %v2123_v11 = vld [vmem:[%s2669_s10] ss:$0 sm:$0xff] }
  0xda   :  { %v873_v16 = vpop.f32.mrf.mxu2 }
  0xdb   :  { %v874_v18 = vadd.f32 %v873_v16, %v861_v12  ;;  %v886_v21 = vpop.f32.mrf.mxu3  ;;  %v1113_v12 = vld [vmem:[#allocation7] sm:$0xff] }
  0xdc   :  { %1135 = vmatpush.msrb.mxu3 %v1113_v12 }
  0xdd   :  { %v887_v23 = vadd.f32 %v886_v21, %v874_v18  ;;  %v1161_v21 = vld [vmem:[#allocation8 + $0x8] sm:$0xff] }
  0xde   :  { %v849_v26 = vpop.f32.mrf.mxu0  ;;  %1987 = vmatpush.msk.msra.mxu3 %vm1171_vm2, %v1162_v20 }
  0xdf   :  { %v994_v29 = vmul.f32 0.05, %v887_v23  ;;  %v862_v30 = vpop.f32.mrf.mxu1  ;;  %v1206_v23 = vld [vmem:[#allocation10 + $0x58] sm:$0xff]  ;;  %v1204_v26 = vld [vmem:[#allocation10 + $0x48] sm:$0xff] }
  0xe0   :  { %1189 = vmatpush.msra.mxu3 %v1161_v21  ;;  %v1202_v30 = vld [vmem:[#allocation10 + $0x38] sm:$0xff] }
  0xe1   :  { %v2540_v32 = vadd.f32 %v994_v29, %v179_v25 }
  0xe2   :  { %v875_v33 = vpop.f32.mrf.mxu2  ;;  %1190 = vmatpush.msra.mxu3 %v1160_v22 }
  0xe3   :  { %1000 = vst [vmem:[%s2673_s14] sm:$0x3f] %v2540_v32  ;;  %1067 = vmatmul.f32.vlgmr.msrb.gmra.mxu0 %v2540_v32  ;;  %v888_v36 = vpop.f32.mrf.mxu3 }
  0xe4   :  { %v1200_v36 = vld [vmem:[#allocation10 + $0x28] sm:$0xff] }
  0xf0   :  { %v899_v43 = vpop.f32.mrf.mxu0 }
  0xf1   :  { %v912_v44 = vpop.f32.mrf.mxu1 }
  0xf2   :  { %v913_v45 = vadd.f32 %v912_v44, %v899_v43 }
  0xf8   :  { %v925_v47 = vpop.f32.mrf.mxu2  ;;  %v901_v53 = vpop.f32.mrf.mxu0 }
  0xf9   :  { %v926_v49 = vadd.f32 %v925_v47, %v913_v45  ;;  %v938_v50 = vpop.f32.mrf.mxu3  ;;  %v914_v55 = vpop.f32.mrf.mxu1  ;;  %v1236_v53 = vld [vmem:[#allocation11 + $0x8] sm:$0xff] }
  0xfb   :  { %v939_v52 = vadd.f32 %v938_v50, %v926_v49  ;;  %v1196_v50 = vld [vmem:[#allocation10 + $0x8] sm:$0xff] }
  0xfd   :  { %v995_v57 = vmul.f32 0.05, %v939_v52  ;;  %v1237_v52 = vld [vmem:[#allocation11 + $0x10] sm:$0xff] }
  0xfe   :  { %1258 = vmatpush.msra.mxu0 %v1237_v52 }
  0xff   :  { %v2550_v14 = vadd.f32 %v995_v57, %v180_v54  ;;  %v2121_v54 = vld [vmem:[%s2665_s6] ss:$0 sm:$0xff]  ;;  %v1235_v57 = vld [vmem:[#allocation11] sm:$0xff] }
 0x100   :  { %v927_v59 = vpop.f32.mrf.mxu2  ;;  %1259 = vmatpush.msra.mxu0 %v1236_v53 }
 0x101   :  { %1001 = vst [vmem:[%s2673_s14 + $0x8] sm:$0x3f] %v2550_v14  ;;  %1087 = vmatmul.f32.vlgmr.msrb.gmra.mxu1 %v2550_v14  ;;  %v940_v15 = vpop.f32.mrf.mxu3  ;;  %v1268_v59 = vld [vmem:[%s2670_s11 + $0x8] sm:$0xff] }
 0x102   :  { %1260 = vmatpush.msra.mxu0 %v1235_v57  ;;  %1322 = vmatpush.msra.mxu2 %v1268_v59  ;;  %v2122_v15 = vld [vmem:[%s2667_s8] ss:$0 sm:$0xff] }
 0x110   :  { %v951_v60 = vpop.f32.mrf.mxu0 }
 0x111   :  { %v964_v1 = vpop.f32.mrf.mxu1 }
 0x112   :  { %v965_v5 = vadd.f32 %v964_v1, %v951_v60 }
 0x118   :  { %v977_v61 = vpop.f32.mrf.mxu2  ;;  %v953_v0 = vpop.f32.mrf.mxu0 }
 0x119   :  { %v978_v62 = vadd.f32 %v977_v61, %v965_v5  ;;  %v990_v63 = vpop.f32.mrf.mxu3  ;;  %v966_v2 = vpop.f32.mrf.mxu1  ;;  %v1270_v5 = vld [vmem:[%s2670_s11 + $0x18] sm:$0x3]  ;;  %v1272_v61 = vld [vmem:[%s2670_s11 + $0x28] sm:$0x3]  ;;  %v1269_v0 = vld [vmem:[%s2670_s11 + $0x10] sm:$0xff] }
 0x11a   :  { %1991 = vmatpush.msk.msra.mxu1 %vm1277_vm7, %v1270_v5  ;;  %1995 = vmatpush.msk.msrb.mxu0 %vm1277_vm7, %v1272_v61  ;;  %v1424_v2 = vld [vmem:[#allocation14 + $0x10] sm:$0xff] }
 0x11b   :  { %v991_v3 = vadd.f32 %v990_v63, %v978_v62  ;;  %v1427_v62 = vld [vmem:[#allocation14 + $0x28] sm:$0x3] }
 0x11c   :  { %v1267_v63 = vld [vmem:[%s2670_s11] sm:$0xff]  ;;  %1342 = vmatpush.msrb.mxu0 %v1269_v0 }
 0x11d   :  { %v996_v6 = vmul.f32 0.05, %v991_v3  ;;  %1302 = vmatpush.msra.mxu1 %v1267_v63  ;;  %v1351_v3 = vld [vmem:[#allocation13 + $0x20] sm:$0x3] }
 0x11f   :  { %v2560_v7 = vadd.f32 %v996_v6, %v181_v4  ;;  %v1348_v4 = vld [vmem:[#allocation13 + $0x8] sm:$0xff]  ;;  %v1350_v6 = vld [vmem:[#allocation13 + $0x18] sm:$0x3] }
 0x120   :  { %v979_v8 = vpop.f32.mrf.mxu2  ;;  %1997 = vmatpush.msk.msrb.mxu1 %vm1277_vm7, %v1350_v6 }
 0x121   :  { %1002 = vst [vmem:[%s2673_s14 + $0x10] sm:$0x3f] %v2560_v7  ;;  %v992_v9 = vpop.f32.mrf.mxu3  ;;  %1107 = vmatmul.f32.vlgmr.msrb.gmra.mxu2 %v2560_v7  ;;  %v1352_v8 = vld [vmem:[#allocation13 + $0x28] sm:$0x3] }
 0x122   :  { %1999 = vmatpush.msk.msrb.mxu2 %vm1277_vm7, %v1351_v3  ;;  %v1347_v9 = vld [vmem:[#allocation13] sm:$0xff] }
 0x123   :  { %1377 = vmatpush.msrb.mxu1 %v1347_v9 }
 0x124   :  { %1397 = vmatpush.msrb.mxu2 %v1348_v4 }
 0x160   :  { %v1068_v16 = vpop.f32.mrf.mxu0 }
 0x17e   :  { %v1088_v13 = vpop.f32.mrf.mxu1 }
 0x17f   :  { %v1089_v17 = vadd.f32 %v1088_v13, %v1068_v16  ;;  %v1426_v16 = vld [vmem:[#allocation14 + $0x20] sm:$0x3] }
 0x1a4   :  { %v1108_v18 = vpop.f32.mrf.mxu2 }
 0x1a5   :  { %v1109_v19 = vadd.f32 %v1108_v18, %v1089_v17  ;;  %v1425_v17 = vld [vmem:[#allocation14 + $0x18] sm:$0x3]  ;;  %v1423_v18 = vld [vmem:[#allocation14 + $0x8] sm:$0xff] }
 0x1a7   :  { %1112 = vst.msk [vmem:[%s2674_s15] sm:$0x3f] %vm1111_vm0, %v1109_v19  ;;  %1986 = vmatmul.msk.f32.vlgmr.msrb.gmra.mxu3 %vm1116_vm1, %v1109_v19  ;;  %v1422_v19 = vld [vmem:[#allocation14] sm:$0xff] }
 0x1a8   :  { %1219 = vmatpush.msrb.mxu3 %v1206_v23 }
 0x1aa   :  { %1220 = vmatpush.msrb.mxu3 %v1205_v24 }
 0x1ac   :  { %1221 = vmatpush.msrb.mxu3 %v1204_v26 }
 0x1ae   :  { %1222 = vmatpush.msrb.mxu3 %v1203_v28 }
 0x1b0   :  { %1223 = vmatpush.msrb.mxu3 %v1202_v30 }
 0x1b2   :  { %1224 = vmatpush.msrb.mxu3 %v1201_v34 }
 0x1b4   :  { %1225 = vmatpush.msrb.mxu3 %v1200_v36  ;;  %v1522_v36 = vld [vmem:[%s2688_s0] sm:$0x3f] }
 0x1b6   :  { %1226 = vmatpush.msrb.mxu3 %v1199_v37 }
 0x1b8   :  { %1227 = vmatpush.msrb.mxu3 %v1198_v38 }
 0x1ba   :  { %1228 = vmatpush.msrb.mxu3 %v1197_v39  ;;  %v1524_v39 = vld [vmem:[%s2688_s0 + $0x10] sm:$0x3f] }
 0x1bc   :  { %1229 = vmatpush.msrb.mxu3 %v1196_v50 }
 0x1be   :  { %1230 = vmatpush.msrb.mxu3 %v1195_v51 }
 0x22a   :  { %v1137_v25 = vpop.f32.mrf.mxu3 }
 0x22b   :  { %v1140_v27 = vmul.f32 %v1137_v25, %v1137_v25 }
 0x22d   :  { %v1142_v29 = vrot.slane %v1140_v27, 2  ;;  %v1145_v33 = vrot.slane %v1140_v27, 4 }
 0x22f   :  { %v1144_v31 = vadd.f32 %v1142_v29, %v1140_v27 }
 0x231   :  { %v1147_v35 = vadd.f32 %v1145_v33, %v1144_v31 }
 0x233   :  { %2124 = vrsqrt.f32 %v1147_v35  ;;  %vm1155_vm3 = vcmp.eq.f32.partialorder %v1147_v35, inf  ;;  %v1158_v47 = vand.u32 2147483648, %v1147_v35  ;;  %vm1157_vm5 = vcmp.eq.f32.partialorder %v1147_v35, 0.0 }
 0x239   :  { %v2125_v40 = vpop.eup %2124 }
 0x23a   :  { %v1149_v41 = vmul.f32 %v2125_v40, %v1147_v35 }
 0x23c   :  { %v1150_v42 = vmul.f32 %v2125_v40, %v1149_v41 }
 0x23e   :  { %v1151_v43 = vmul.f32 0.5, %v1150_v42 }
 0x240   :  { %v1152_v44 = vsub.f32 1.5, %v1151_v43  ;;  %v1523_v43 = vld [vmem:[%s2688_s0 + $0x8] sm:$0x3f]  ;;  %s1572_s0 = sshll.u32 %s2675_s16, 4  ;;  %s1573_s0 = int_to_ptr.hbm [resolvable:$true] %s1572_s0 }
 0x242   :  { %v1153_v45 = vmul.f32 %v2125_v40, %v1152_v44 }
 0x244   :  { %v1154_v46 = vmul.f32 %v1153_v45, %v1147_v35 }
 0x246   :  { %v1156_v48 = vsel %vm1155_vm3, %v1147_v35, %v1154_v46 }
 0x247   :  { %v1159_v49 = vsel %vm1157_vm5, %v1158_v47, %v1156_v48 }
 0x248   :  { %1988 = vmatmul.msk.f32.vlgmr.msra.gmra.mxu3 %vm1167_vm4, %v1159_v49 }
 0x249   :  { %2007 = vmatpush.msk.msra.mxu3 %vm1277_vm7, %v1427_v62 }
 0x24b   :  { %1492 = vmatpush.msra.mxu3 %v1424_v2 }
 0x2cb   :  { %v1192_v55 = vpop.f32.mrf.mxu3 }
 0x2cc   :  { %v1193_v56 = vadd.f32 %v2121_v54, %v1192_v55 }
 0x2ce   :  { %1989 = vmatmul.msk.f32.vlgmr.msrb.gmra.mxu3 %vm1211_vm6, %v1193_v56  ;;  %v2371_v56 = vmov 384.0  }
 0x2cf   :  { %2126 = vrcp.f32 %v2371_v56 }
 0x2d5   :  { %v2127_v57 = vpop.eup %2126 }
 0x2d6   :  { %v1540_v58 = vmul.f32 384.0, %v2127_v57  ;;  %vm1544_vm12 = vweird.f32 %v2127_v57 }
 0x2d8   :  { %v1541_v59 = vsub.f32 1.0, %v1540_v58 }
 0x351   :  { %v1232_v60 = vpop.f32.mrf.mxu3 }
 0x352   :  { %v1233_v1 = vadd.f32 %v2122_v15, %v1232_v60  ;;  %v1542_v15 = vmul.f32 %v2127_v57, %v1541_v59 }
 0x354   :  { %1990 = vmatmul.msk.f32.vlgmr.msra.gmra.mxu0 %vm1116_vm1, %v1233_v1  ;;  %v1543_v60 = vadd.f32 %v2127_v57, %v1542_v15 }
 0x355   :  { %2001 = vmatpush.msk.msra.mxu0 %vm1277_vm7, %v1352_v8 }
 0x356   :  { %v1545_v1 = vsel %vm1544_vm12, %v2127_v57, %v1543_v60 }
 0x357   :  { %1417 = vmatpush.msra.mxu0 %v1349_v10 }
 0x3d1   :  { %v1262_v12 = vpop.f32.mrf.mxu0 }
 0x3d2   :  { %v1263_v13 = vadd.f32 %v2123_v11, %v1262_v12 }
 0x3d4   :  { %1992 = vmatmul.msk.f32.vlgmr.msra.gmra.mxu1 %vm1273_vm8, %v1263_v13  ;;  %1994 = vmatmul.msk.f32.vlgmr.msra.gmra.mxu2 %vm1273_vm8, %v1263_v13  ;;  %1266 = vst.msk [vmem:[#allocation16] sm:$0x3] %vm1265_vm9, %v1263_v13 }
 0x3d5   :  { %1996 = vmatmul.msk.f32.vlgmr.msrb.gmra.mxu0 %vm1273_vm8, %v1263_v13  ;;  %2008 = vmatmul.msk.f32.vlgmr.msra.gmra.mxu3 %vm1273_vm8, %v1263_v13  ;;  %1575 = dma.vmem_to_hbm [thread:$0]  %s1571_s29, 32, %s1573_s0, [#allocation4]  }
 0x3d6   :  { %2005 = vmatpush.msk.msra.mxu2 %vm1277_vm7, %v1426_v16  ;;  %2003 = vmatpush.msk.msra.mxu1 %vm1277_vm7, %v1425_v17 }
 0x3d8   :  { %1472 = vmatpush.msra.mxu2 %v1423_v18  ;;  %1452 = vmatpush.msra.mxu1 %v1422_v19 }
 0x3dc   :  { %1998 = vmatmul.msk.f32.vlgmr.msrb.gmra.mxu1 %vm1273_vm8, %v1263_v13  ;;  %2000 = vmatmul.msk.f32.vlgmr.msrb.gmra.mxu2 %vm1273_vm8, %v1263_v13 }
 0x3dd   :  { %2002 = vmatmul.msk.f32.vlgmr.msra.gmra.mxu0 %vm1273_vm8, %v1263_v13 }
 0x3e4   :  { %2004 = vmatmul.msk.f32.vlgmr.msra.gmra.mxu1 %vm1273_vm8, %v1263_v13  ;;  %2006 = vmatmul.msk.f32.vlgmr.msra.gmra.mxu2 %vm1273_vm8, %v1263_v13 }
 0x451   :  { %v1304_v20 = vpop.f32.mrf.mxu1 }
 0x452   :  { %v1344_v21 = vpop.f32.mrf.mxu0 }
 0x457   :  { %v1324_v22 = vpop.f32.mrf.mxu2 }
 0x458   :  { %v1494_v28 = vpop.f32.mrf.mxu3 }
 0x459   :  { %v1379_v23 = vpop.f32.mrf.mxu1  ;;  %v1511_v34 = vrot.slane %v1494_v28, 4 }
 0x45a   :  { %v1419_v24 = vpop.f32.mrf.mxu0  ;;  %v1500_v25 = vrot.slane %v1379_v23, 6 }
 0x45b   :  { %v1502_v26 = vrot.slane %v1419_v24, 6 }
 0x45c   :  { %v1515_v31 = vsel %vm1277_vm7, %v1304_v20, %v1500_v25 }
 0x45d   :  { %v1517_v33 = vsel %vm1277_vm7, %v1344_v21, %v1502_v26 }
 0x45e   :  { %v1521_v38 = vsel %vm1518_vm10, %v1517_v33, %v1511_v34 }
 0x45f   :  { %v1399_v27 = vpop.f32.mrf.mxu2  ;;  %v1527_v45 = vadd.f32 %v1524_v39, %v1521_v38 }
 0x460   :  { %v1501_v37 = vrot.slane %v1399_v27, 6 }
 0x461   :  { %v1454_v29 = vpop.f32.mrf.mxu1  ;;  %v1530_v50 = vsub.f32 %v2560_v7, %v1527_v45 }
 0x462   :  { %v1509_v30 = vrot.slane %v1454_v29, 4  ;;  %v1516_v44 = vsel %vm1277_vm7, %v1324_v22, %v1501_v37 }
 0x463   :  { %v1535_v54 = vsel %vm1531_vm11, %v1530_v50, 0.0 }
 0x464   :  { %v1519_v35 = vsel %vm1518_vm10, %v1515_v31, %v1509_v30 }
 0x465   :  { %v1525_v40 = vadd.f32 %v1522_v36, %v1519_v35 }
 0x467   :  { %v1474_v41 = vpop.f32.mrf.mxu2  ;;  %v1528_v48 = vsub.f32 %v2540_v32, %v1525_v40 }
 0x468   :  { %v1510_v42 = vrot.slane %v1474_v41, 4 }
 0x469   :  { %v1532_v51 = vsel %vm1531_vm11, %v1528_v48, 0.0 }
 0x46a   :  { %v1520_v46 = vsel %vm1518_vm10, %v1516_v44, %v1510_v42 }
 0x46b   :  { %v1526_v47 = vadd.f32 %v1523_v43, %v1520_v46 }
 0x46d   :  { %v1529_v49 = vsub.f32 %v2550_v14, %v1526_v47 }
 0x46f   :  { %v1533_v52 = vsel %vm1531_vm11, %v1529_v49, 0.0 }
 0x470   :  { %v1534_v53 = vadd.f32 %v1533_v52, %v1532_v51 }
 0x472   :  { %v1536_v55 = vadd.f32 %v1535_v54, %v1534_v53 }
 0x474   :  { %1537 = vadd.xlane.f32.xlu0 %v1536_v55 }
 0x4e7   :  { %v1538_v5 = vpop.xlane.xlu0 %1537 }
 0x4e8   :  { %v1546_v61 = vmul.f32 %v1545_v1, %v1538_v5 }
 0x4ea   :  { %v1547_v62 = vadd.f32 %v1546_v61, %v1525_v40  ;;  %v1548_v63 = vadd.f32 %v1546_v61, %v1526_v47  ;;  %v1549_v0 = vadd.f32 %v1546_v61, %v1527_v45  ;;  %1554 = vst.msk [vmem:[%s2677_s18] sm:$0x3f] %vm1553_vm13, %v1546_v61 }
 0x4ec   :  { %1550 = vst [vmem:[%s2676_s17] sm:$0x3f] %v1547_v62  ;;  %v1555_v2 = vsub.f32 %v1547_v62, %v2540_v32  ;;  %v1556_v3 = vsub.f32 %v1548_v63, %v2550_v14  ;;  %v1557_v4 = vsub.f32 %v1549_v0, %v2560_v7 }
 0x4ed   :  { %1551 = vst [vmem:[%s2676_s17 + $0x8] sm:$0x3f] %v1548_v63 }
 0x4ee   :  { %1552 = vst [vmem:[%s2676_s17 + $0x10] sm:$0x3f] %v1549_v0 }
 0x4ef   :  { %1558 = vst [vmem:[%s2678_s19] sm:$0x3f] %v1555_v2 }
 0x4f0   :  { %1559 = vst [vmem:[%s2678_s19 + $0x8] sm:$0x3f] %v1556_v3 }
 0x4f1   :  { %1560 = vst [vmem:[%s2678_s19 + $0x10] sm:$0x3f] %v1557_v4 }
 0x4f2   :  { %2354 = dma.done.wait [#allocation4], 32  }
 0x4f3   :  { %2355 = vsyncadd [#allocation4], 4294967264 }
 0x4f4   :  { %1596 = vsyncpa [#allocation3], 1 }
 0x4f5   :  { %1597 = vsyncpa [#allocation6], 1 }
 0x4f6   :  { %1598 = vsyncpa [#allocation9], 1 }
 0x4f7   :  { %1599 = vsyncpa [#allocation12], 1 }
 0x4f8   :  { %1600 = vsyncpa [#allocation15], 1 }
 0x4f9   :  { %1601 = vsyncpa [#allocation4], 1 }

</bundles_post_ra>
